<compile_context>
chip_gen: v5e
topology: v5e:2x2
jax: 0.10.0
libtpu: 0.0.40
codegen_flags: <defaults>
</compile_context>

<pallas_src>
import math
import functools

import numpy as np
import jax
import jax.numpy as jnp
from jax.experimental import pallas as pl
from jax.experimental.pallas import tpu as pltpu


# ----------------------------- fused Pallas kernel -----------------------------

def tabmt_fused_kernel(idx_ref, mrow_ref, mkey_ref, emb_ref, tok_ref, pos_ref,
                       wqkv_ref, bqkv_ref, wo_ref, bo_ref,
                       g1_ref, be1_ref, w1_ref, b1_ref, w2_ref, b2_ref,
                       g2_ref, be2_ref, etf_ref, hb_ref, o_ref,
                       *, n_layers, head, d_k, d_v, seq_len, d_model, kg, bt):
    S, D = seq_len, d_model
    R = bt * S                              # rows in this batch tile
    dh_k = d_k // head
    dh_v = d_v // head
    inv_sqrt_dk = 1.0 / math.sqrt(d_k)      # module scales by full d_k

    # ---- in-kernel embedding gather: one-hot (R, S*KG) @ slab (S*KG, D) ----
    lane = jax.lax.broadcasted_iota(jnp.int32, (R, S * kg), 1)
    onehot = (lane == idx_ref[...]).astype(jnp.float32)          # idx is (R, 1)
    x = jnp.dot(onehot, emb_ref[...], preferred_element_type=jnp.float32)  # (R, D)

    # mask-token substitution + positional embedding (dropout = identity)
    x = jnp.where(mrow_ref[...] > 0.5, tok_ref[...], x)
    x = (x.reshape(bt, S, D) + pos_ref[...][None, :, :]).reshape(R, D)

    # additive key-mask bias, hoisted out of the layer/example loops
    kbias = mkey_ref[...] * (-1e9)                                # (bt, 1, S)

    # ---- transformer encoder stack (weights VMEM-resident, bf16 MXU operands) ----
    # TODO(synk): switch to lax.fori_loop + dynamic layer index if n_layers grows.
    for l in range(n_layers):
        # fused QKV projection over all rows, padded to a full 128-lane tile
        qkv = jnp.dot(x.astype(jnp.bfloat16), wqkv_ref[l],
                      preferred_element_type=jnp.float32) + bqkv_ref[l]   # (R, QKVP)

        # per-example attention, all heads fused (one transpose, one softmax)
        o_t_blocks = []
        for b in range(bt):   # bt is small here; use fori_loop for large tiles
            qkv_t = qkv[b * S:(b + 1) * S, :].T                           # (QKVP, S)
            q3 = qkv_t[0:d_k, :].reshape(head, dh_k, S)                   # sublane slices,
            k3 = qkv_t[d_k:2 * d_k, :].reshape(head, dh_k, S)             # free reshapes
            v3 = qkv_t[2 * d_k:2 * d_k + d_v, :].reshape(head, dh_v, S)
            s = jax.lax.dot_general(q3, k3, (((1,), (1,)), ((0,), (0,))),
                                    preferred_element_type=jnp.float32) * inv_sqrt_dk
            s = s + kbias[b]                                              # (head, S, S)
            s = s - jnp.max(s, axis=-1, keepdims=True)
            p = jnp.exp(s)
            p = p * pl.reciprocal(jnp.sum(p, axis=-1, keepdims=True), approx=True)
            o_t = jax.lax.dot_general(v3, p, (((2,), (2,)), ((0,), (0,))),
                                      preferred_element_type=jnp.float32)  # (head, dh_v, S)
            o_t_blocks.append(o_t.reshape(d_v, S))                        # PyTorch head order
        o_t_all = (o_t_blocks[0] if bt == 1
                   else jnp.concatenate(o_t_blocks, axis=1))              # (d_v, R)

        # W_O over all rows in one transposed-contraction GEMM -> row-major (R, D)
        attn = jax.lax.dot_general(o_t_all.astype(jnp.bfloat16), wo_ref[l],
                                   (((0,), (0,)), ((), ())),
                                   preferred_element_type=jnp.float32) + bo_ref[l]

        x = x + attn                                                      # residual
        mu = jnp.mean(x, axis=-1, keepdims=True)                          # LayerNorm 1
        var = jnp.mean(jnp.square(x - mu), axis=-1, keepdims=True)
        x = (x - mu) * jax.lax.rsqrt(var + 1e-5) * g1_ref[l] + be1_ref[l]

        h = jnp.maximum(
            jnp.dot(x.astype(jnp.bfloat16), w1_ref[l],
                    preferred_element_type=jnp.float32) + b1_ref[l], 0.0)  # FFN
        ffo = jnp.dot(h.astype(jnp.bfloat16), w2_ref[l],
                      preferred_element_type=jnp.float32) + b2_ref[l]
        x = x + ffo                                                       # residual
        mu = jnp.mean(x, axis=-1, keepdims=True)                          # LayerNorm 2
        var = jnp.mean(jnp.square(x - mu), axis=-1, keepdims=True)
        x = (x - mu) * jax.lax.rsqrt(var + 1e-5) * g2_ref[l] + be2_ref[l]

    # ---- dynamic-linear heads: one lane-dense batched matmul, scale pre-folded ----
    xT = jnp.transpose(x.reshape(bt, S, D), (1, 0, 2))                    # (S, bt, D)
    logits = jax.lax.dot_general(xT, etf_ref[...], (((2,), (1,)), ((0,), (0,))),
                                 preferred_element_type=jnp.float32)      # (S, bt, Kpad)
    o_ref[...] = logits + hb_ref[...]                                     # unmasked store


# ----------------------------- pallas_call wrapper -----------------------------

def _choose_bt(batch_size):
    """Pick the per-grid-step batch tile.

    Small batches: fold everything into one step (per-step overhead dominates).
    Large batches: keep the tile a multiple of 8 sublanes and keep >= 2 grid
    steps so v7x's two TensorCores both get work; the cap keeps double-buffered
    input+output blocks far below v7x's 64 MiB VMEM.
    """
    if batch_size <= 16:
        return batch_size
    for bt in range(min(256, batch_size // 2), 7, -1):
        if batch_size % bt == 0 and bt % 8 == 0:
            return bt
    return batch_size


def tabmt_fused_call(gather_idx, mrow, mkey, packed, *, B, S, D,
                     n_layers, head, d_k, d_v, kpad, kg, bt):
    QKVP = packed['wqkv'].shape[-1]
    d_ff = packed['w1'].shape[-1]
    grid = (B // bt,)

    kern = functools.partial(tabmt_fused_kernel, n_layers=n_layers, head=head,
                             d_k=d_k, d_v=d_v, seq_len=S, d_model=D, kg=kg, bt=bt)
    rep2 = lambda shp: pl.BlockSpec(shp, lambda g: (0, 0))       # replicated weights
    rep3 = lambda shp: pl.BlockSpec(shp, lambda g: (0, 0, 0))

    return pl.pallas_call(
        kern,
        out_shape=jax.ShapeDtypeStruct((S, B, kpad), jnp.float32),
        grid=grid,
        in_specs=[
            pl.BlockSpec((bt * S, 1), lambda g: (g, 0)),          # gather indices
            pl.BlockSpec((bt * S, 1), lambda g: (g, 0)),          # row mask
            pl.BlockSpec((bt, 1, S), lambda g: (g, 0, 0)),        # key mask
            rep2((S * kg, D)),                                    # embedding slab (f32)
            rep2((1, D)),                                         # mask token
            rep2((S, D)),                                         # positional emb
            rep3((n_layers, D, QKVP)), rep3((n_layers, 1, QKVP)), # W_QKV (bf16), b_QKV
            rep3((n_layers, d_v, D)), rep3((n_layers, 1, D)),     # W_O (bf16), b_O
            rep3((n_layers, 1, D)), rep3((n_layers, 1, D)),       # LN1 gamma/beta
            rep3((n_layers, D, d_ff)), rep3((n_layers, 1, d_ff)), # FFN W1 (bf16), b1
            rep3((n_layers, d_ff, D)), rep3((n_layers, 1, D)),    # FFN W2 (bf16), b2
            rep3((n_layers, 1, D)), rep3((n_layers, 1, D)),       # LN2 gamma/beta
            rep3((S, D, kpad)),                                   # head E^T (scale folded)
            rep3((S, 1, kpad)),                                   # head bias (scale folded)
        ],
        out_specs=pl.BlockSpec((S, bt, kpad), lambda g: (0, g, 0)),
        compiler_params=pltpu.CompilerParams(dimension_semantics=("parallel",)),
    )(gather_idx, mrow, mkey, packed['emb_flat'], packed['mask_token'], packed['pos_E'],
      packed['wqkv'], packed['bqkv'], packed['wo'], packed['bo'],
      packed['g1'], packed['be1'], packed['w1'], packed['b1'],
      packed['w2'], packed['b2'], packed['g2'], packed['be2'],
      packed['etf'], packed['hbias'])


# ----------------------------- TabMT forward -----------------------------

def tabmt_forward(x_idx, mask, packed, ks, *, n_layers, head, d_k, d_v, kpad, kg):
    B, S = x_idx.shape
    D = packed['pos_E'].shape[-1]
    bt = _choose_bt(B)
    # only glue left outside the kernel: flat gather indices + mask reshapes
    offs = (jnp.arange(S, dtype=jnp.int32) * kg)[None, :]
    gather_idx = (x_idx.astype(jnp.int32) + offs).reshape(B * S, 1)
    mask_f = mask.astype(jnp.float32)
    preds_pad = tabmt_fused_call(
        gather_idx, mask_f.reshape(B * S, 1), mask_f.reshape(B, 1, S), packed,
        B=B, S=S, D=D, n_layers=n_layers, head=head, d_k=d_k, d_v=d_v,
        kpad=kpad, kg=kg, bt=bt)                                  # (S, B, Kpad)
    return [preds_pad[i, :, :ks[i]] for i in range(S)]


# ----------------------------- parameter packing -----------------------------

def pack_params(params, ks, *, kpad, kg):
    """Stack/pad per-layer weights once; matmul weights go to bf16 (MXU-native)."""
    blocks = params['blocks']
    S = len(ks)
    d_k = blocks[0]['wq'].shape[1]
    d_v = blocks[0]['wv'].shape[1]
    qkv_real = 2 * d_k + d_v
    qkvp = ((qkv_real + 127) // 128) * 128          # pad fused QKV width to full lanes

    pad_cols = lambda w, width: jnp.pad(w, ((0, 0), (0, width - w.shape[1])))
    wqkv = jnp.stack([pad_cols(jnp.concatenate([b['wq'], b['wk'], b['wv']], axis=1), qkvp)
                      for b in blocks]).astype(jnp.bfloat16)                 # (N, D, QKVP)
    bqkv = jnp.stack([jnp.pad(jnp.concatenate([b['bq'], b['bk'], b['bv']]),
                              (0, qkvp - qkv_real))[None, :] for b in blocks])  # f32

    stack_mat = lambda n: jnp.stack([b[n] for b in blocks]).astype(jnp.bfloat16)
    stack_row = lambda n: jnp.stack([b[n][None, :] for b in blocks])          # f32

    # embedding gather slab (exact f32 rows; the gather is a one-hot matmul)
    assert max(ks) <= kg
    emb_flat = jnp.concatenate(
        [jnp.pad(params['emb_weights'][i], ((0, kg - ks[i]), (0, 0))) for i in range(S)],
        axis=0)                                                               # (S*KG, D)

    # dynamic-linear heads: fold 1/sigmoid(temp) into E^T and bias (done once)
    etf, hbias = [], []
    for i in range(S):
        scale = 1.0 / jax.nn.sigmoid(params['dl_temp'][i])
        etf.append(jnp.pad(params['emb_weights'][i].T * scale,
                           ((0, 0), (0, kpad - ks[i]))))                      # (D, Kpad)
        hbias.append(jnp.pad(params['dl_bias'][i] * scale, (0, kpad - ks[i]))[None, :])
    etf = jnp.stack(etf)                                                      # (S, D, Kpad)
    hbias = jnp.stack(hbias)                                                  # (S, 1, Kpad)

    return dict(
        mask_token=params['mask_token'][None, :], pos_E=params['pos_E'],
        wqkv=wqkv, bqkv=bqkv, wo=stack_mat('wo'), bo=stack_row('bo'),
        g1=stack_row('g1'), be1=stack_row('be1'),
        w1=stack_mat('w1'), b1=stack_row('b1'),
        w2=stack_mat('w2'), b2=stack_row('b2'),
        g2=stack_row('g2'), be2=stack_row('be2'),
        emb_flat=emb_flat, etf=etf, hbias=hbias)


# ----------------------------- deterministic params -----------------------------

def init_params(key, *, schema, ks, occs, seq_len, d_model, d_k, d_v, head, d_ff, N):
    keys = iter(jax.random.split(key, 256))
    nxt = lambda: next(keys)

    emb_weights = []
    for i in range(seq_len):
        if schema[i] == 'c':
            emb_weights.append(jax.random.normal(nxt(), (ks[i], d_model)) * 0.05)
        else:
            occ = occs[i]
            lo = jax.random.normal(nxt(), (1, d_model)) * 0.05
            hi = jax.random.normal(nxt(), (1, d_model)) * 0.05
            r = ((occ - occ[0]) / (occ[-1] - occ[0]))[:, None]
            emb_weights.append(r * lo + (1.0 - r) * hi)   # E param inits to zeros

    mask_token = jax.random.normal(nxt(), (d_model,)) * 0.05
    pos_E = jax.random.normal(nxt(), (seq_len, d_model)) * 0.01

    blocks = []
    for _ in range(N):
        lin_T = lambda din, dout: jax.random.normal(nxt(), (din, dout)) * 0.05
        vec = lambda d: jax.random.normal(nxt(), (d,)) * 0.05
        blocks.append(dict(
            wq=lin_T(d_model, d_k), bq=vec(d_k),
            wk=lin_T(d_model, d_k), bk=vec(d_k),
            wv=lin_T(d_model, d_v), bv=vec(d_v),
            wo=lin_T(d_v, d_model), bo=vec(d_model),
            g1=jnp.ones((d_model,), jnp.float32), be1=jnp.zeros((d_model,), jnp.float32),
            w1=lin_T(d_model, d_ff), b1=vec(d_ff),
            w2=lin_T(d_ff, d_model), b2=vec(d_model),
            g2=jnp.ones((d_model,), jnp.float32), be2=jnp.zeros((d_model,), jnp.float32),
        ))

    dl_bias = [jnp.zeros((ks[i],), jnp.float32) for i in range(seq_len)]
    dl_temp = [jnp.ones((1,), jnp.float32) for _ in range(seq_len)]

    return dict(emb_weights=emb_weights, mask_token=mask_token, pos_E=pos_E,
                blocks=blocks, dl_bias=dl_bias, dl_temp=dl_temp)


# ----------------------------- pure-JAX reference -----------------------------

def _ln(x, g, b):
    mu = jnp.mean(x, axis=-1, keepdims=True)
    var = jnp.mean(jnp.square(x - mu), axis=-1, keepdims=True)
    return (x - mu) * jax.lax.rsqrt(var + 1e-5) * g + b


def ref_forward(x_idx, mask, params, *, head, d_k, d_v):
    B, S = x_idx.shape
    dh_k, dh_v = d_k // head, d_v // head
    cols = [jnp.take(params['emb_weights'][i], x_idx[:, i], axis=0) for i in range(S)]
    x = jnp.stack(cols, axis=1)
    x = jnp.where(mask[:, :, None], params['mask_token'][None, None, :], x)
    x = x + params['pos_E'][None]
    for blk in params['blocks']:
        q = (x @ blk['wq'] + blk['bq']).reshape(B, S, head, dh_k).transpose(0, 2, 1, 3)
        k = (x @ blk['wk'] + blk['bk']).reshape(B, S, head, dh_k).transpose(0, 2, 1, 3)
        v = (x @ blk['wv'] + blk['bv']).reshape(B, S, head, dh_v).transpose(0, 2, 1, 3)
        s = jnp.einsum('bhqd,bhkd->bhqk', q, k) / math.sqrt(d_k)
        s = jnp.where(mask[:, None, None, :], -1e9, s)
        p = jax.nn.softmax(s, axis=-1)
        o = jnp.einsum('bhqk,bhkd->bhqd', p, v).transpose(0, 2, 1, 3).reshape(B, S, d_v)
        attn = o @ blk['wo'] + blk['bo']
        x = _ln(x + attn, blk['g1'], blk['be1'])
        x = _ln(x + jax.nn.relu(x @ blk['w1'] + blk['b1']) @ blk['w2'] + blk['b2'],
                blk['g2'], blk['be2'])
    preds = []
    for i in range(S):
        E = params['emb_weights'][i]
        logits = x[:, i, :] @ E.T + params['dl_bias'][i]
        preds.append(logits / jax.nn.sigmoid(params['dl_temp'][i]))
    return preds


# ----------------------------- main -----------------------------

if __name__ == "__main__":
    d_model, d_k, d_v, head, d_ff, N = 32, 32, 32, 4, 64, 2
    seq_len, batch = 8, 2
    schema = ['c', 'n', 'c', 'n', 'c', 'n', 'c', 'n']
    ks = [5, 6, 7, 6, 5, 8, 6, 7]
    KPAD = 128   # lane-dense padded class width for the dynamic-linear heads
    KG = 16      # per-column padding in the gather slab (S*KG = 128 one-hot lanes)

    key = jax.random.PRNGKey(0)
    k_occ, k_par, k_x, k_m = jax.random.split(key, 4)

    occ_keys = jax.random.split(k_occ, seq_len)
    occs = [None] * seq_len
    for i in range(seq_len):
        if schema[i] == 'n':
            occs[i] = jnp.sort(jax.random.uniform(occ_keys[i], (ks[i],),
                                                  minval=0.0, maxval=10.0))

    params = init_params(k_par, schema=schema, ks=ks, occs=occs, seq_len=seq_len,
                         d_model=d_model, d_k=d_k, d_v=d_v, head=head,
                         d_ff=d_ff, N=N)
    packed = pack_params(params, ks, kpad=KPAD, kg=KG)   # stacked/padded (done once)

    x_idx = jnp.stack(
        [jax.random.randint(jax.random.fold_in(k_x, i), (batch,), 0, ks[i])
         for i in range(seq_len)], axis=1).astype(jnp.int32)          # (B, S)
    mask = jax.random.uniform(k_m, (batch, seq_len)) < 0.3            # (B, S) bool

    preds = tabmt_forward(x_idx, mask, packed, ks, n_layers=N, head=head,
                          d_k=d_k, d_v=d_v, kpad=KPAD, kg=KG)
    preds = jax.block_until_ready(preds)

    ref = ref_forward(x_idx, mask, params, head=head, d_k=d_k, d_v=d_v)
    # 5e-3 tolerance: QKV/W_O/FFN weights+operands are bf16 on the MXU (f32
    # accumulation) per the perf review; the f32 reference differs by bf16
    # rounding only.
    for p, r in zip(preds, ref):
        assert p.shape == r.shape
        np.testing.assert_allclose(np.asarray(p), np.asarray(r),
                                   rtol=5e-3, atol=5e-3)

    print("KERNEL_OK")
</pallas_src>

<mosaic_0001>
module attributes {stable_mosaic.version = 11 : i64} {
  func.func @tabmt_fused_kernel(%arg0: i32, %arg1: memref<16x1xi32, #tpu.memory_space<vmem>>, %arg2: memref<16x1xf32, #tpu.memory_space<vmem>>, %arg3: memref<2x1x8xf32, #tpu.memory_space<vmem>>, %arg4: memref<128x32xf32, #tpu.memory_space<vmem>>, %arg5: memref<1x32xf32, #tpu.memory_space<vmem>>, %arg6: memref<8x32xf32, #tpu.memory_space<vmem>>, %arg7: memref<2x32x128xbf16, #tpu.memory_space<vmem>>, %arg8: memref<2x1x128xf32, #tpu.memory_space<vmem>>, %arg9: memref<2x32x32xbf16, #tpu.memory_space<vmem>>, %arg10: memref<2x1x32xf32, #tpu.memory_space<vmem>>, %arg11: memref<2x1x32xf32, #tpu.memory_space<vmem>>, %arg12: memref<2x1x32xf32, #tpu.memory_space<vmem>>, %arg13: memref<2x32x64xbf16, #tpu.memory_space<vmem>>, %arg14: memref<2x1x64xf32, #tpu.memory_space<vmem>>, %arg15: memref<2x64x32xbf16, #tpu.memory_space<vmem>>, %arg16: memref<2x1x32xf32, #tpu.memory_space<vmem>>, %arg17: memref<2x1x32xf32, #tpu.memory_space<vmem>>, %arg18: memref<2x1x32xf32, #tpu.memory_space<vmem>>, %arg19: memref<8x32x128xf32, #tpu.memory_space<vmem>>, %arg20: memref<8x1x128xf32, #tpu.memory_space<vmem>>, %arg21: memref<8x2x128xf32, #tpu.memory_space<vmem>>) attributes {dimension_semantics = [#tpu.dimension_semantics<parallel>], iteration_bounds = array<i64: 1>, scalar_prefetch = 0 : i64, scratch_operands = 0 : i64, tpu.core_type = #tpu.core_type<tc>, window_params = [{transform_indices = @transform_0, window_bounds = array<i64: 16, 1>}, {transform_indices = @transform_1, window_bounds = array<i64: 16, 1>}, {transform_indices = @transform_2, window_bounds = array<i64: 2, 1, 8>}, {pipeline_mode = #tpu.pipeline_mode<synchronous>, transform_indices = @transform_3, window_bounds = array<i64: 128, 32>}, {pipeline_mode = #tpu.pipeline_mode<synchronous>, transform_indices = @transform_4, window_bounds = array<i64: 1, 32>}, {pipeline_mode = #tpu.pipeline_mode<synchronous>, transform_indices = @transform_5, window_bounds = array<i64: 8, 32>}, {pipeline_mode = #tpu.pipeline_mode<synchronous>, transform_indices = @transform_6, window_bounds = array<i64: 2, 32, 128>}, {pipeline_mode = #tpu.pipeline_mode<synchronous>, transform_indices = @transform_7, window_bounds = array<i64: 2, 1, 128>}, {pipeline_mode = #tpu.pipeline_mode<synchronous>, transform_indices = @transform_8, window_bounds = array<i64: 2, 32, 32>}, {pipeline_mode = #tpu.pipeline_mode<synchronous>, transform_indices = @transform_9, window_bounds = array<i64: 2, 1, 32>}, {pipeline_mode = #tpu.pipeline_mode<synchronous>, transform_indices = @transform_10, window_bounds = array<i64: 2, 1, 32>}, {pipeline_mode = #tpu.pipeline_mode<synchronous>, transform_indices = @transform_11, window_bounds = array<i64: 2, 1, 32>}, {pipeline_mode = #tpu.pipeline_mode<synchronous>, transform_indices = @transform_12, window_bounds = array<i64: 2, 32, 64>}, {pipeline_mode = #tpu.pipeline_mode<synchronous>, transform_indices = @transform_13, window_bounds = array<i64: 2, 1, 64>}, {pipeline_mode = #tpu.pipeline_mode<synchronous>, transform_indices = @transform_14, window_bounds = array<i64: 2, 64, 32>}, {pipeline_mode = #tpu.pipeline_mode<synchronous>, transform_indices = @transform_15, window_bounds = array<i64: 2, 1, 32>}, {pipeline_mode = #tpu.pipeline_mode<synchronous>, transform_indices = @transform_16, window_bounds = array<i64: 2, 1, 32>}, {pipeline_mode = #tpu.pipeline_mode<synchronous>, transform_indices = @transform_17, window_bounds = array<i64: 2, 1, 32>}, {pipeline_mode = #tpu.pipeline_mode<synchronous>, transform_indices = @transform_18, window_bounds = array<i64: 8, 32, 128>}, {pipeline_mode = #tpu.pipeline_mode<synchronous>, transform_indices = @transform_19, window_bounds = array<i64: 8, 1, 128>}, {transform_indices = @transform_20, window_bounds = array<i64: 8, 2, 128>}]} {
    %0 = tpu.iota {dimensions = array<i32: 1>} : vector<16x128xi32>
    %c0 = arith.constant 0 : index
    %c0_0 = arith.constant 0 : index
    %1 = vector.load %arg1[%c0, %c0_0] : memref<16x1xi32, #tpu.memory_space<vmem>>, vector<16x1xi32>
    %2 = vector.broadcast %1 : vector<16x1xi32> to vector<16x128xi32>
    %3 = arith.cmpi eq, %0, %2 : vector<16x128xi32>
    %4 = arith.extui %3 : vector<16x128xi1> to vector<16x128xi32>
    %5 = arith.sitofp %4 : vector<16x128xi32> to vector<16x128xf32>
    %c0_1 = arith.constant 0 : index
    %c0_2 = arith.constant 0 : index
    %6 = vector.load %arg4[%c0_1, %c0_2] : memref<128x32xf32, #tpu.memory_space<vmem>>, vector<128x32xf32>
    %cst = arith.constant dense<0.000000e+00> : vector<16x32xf32>
    %7 = tpu.matmul %5, %6, %cst {dimension_numbers = #tpu.dot_dimension_numbers<[1], [0], [0], [1], [0, 0, 1, 1], [], []>} : vector<16x128xf32>, vector<128x32xf32>, vector<16x32xf32> -> vector<16x32xf32>
    %c0_3 = arith.constant 0 : index
    %c0_4 = arith.constant 0 : index
    %8 = vector.load %arg2[%c0_3, %c0_4] : memref<16x1xf32, #tpu.memory_space<vmem>>, vector<16x1xf32>
    %cst_5 = arith.constant 5.000000e-01 : f32
    %9 = vector.broadcast %cst_5 : f32 to vector<16x1xf32>
    %10 = arith.cmpf ogt, %8, %9 : vector<16x1xf32>
    %c0_6 = arith.constant 0 : index
    %c0_7 = arith.constant 0 : index
    %11 = vector.load %arg5[%c0_6, %c0_7] : memref<1x32xf32, #tpu.memory_space<vmem>>, vector<1x32xf32>
    %12 = vector.shape_cast %10 : vector<16x1xi1> to vector<16x1xi1>
    %13 = vector.broadcast %12 : vector<16x1xi1> to vector<16x32xi1>
    %14 = vector.shape_cast %11 : vector<1x32xf32> to vector<1x32xf32>
    %15 = vector.broadcast %14 : vector<1x32xf32> to vector<16x32xf32>
    %16 = arith.select %13, %15, %7 : vector<16x32xi1>, vector<16x32xf32>
    %17 = vector.shape_cast %16 : vector<16x32xf32> to vector<2x8x32xf32>
    %c0_8 = arith.constant 0 : index
    %c0_9 = arith.constant 0 : index
    %18 = vector.load %arg6[%c0_8, %c0_9] : memref<8x32xf32, #tpu.memory_space<vmem>>, vector<8x32xf32>
    %19 = vector.shape_cast %18 : vector<8x32xf32> to vector<1x8x32xf32>
    %20 = vector.broadcast %19 : vector<1x8x32xf32> to vector<2x8x32xf32>
    %21 = arith.addf %17, %20 : vector<2x8x32xf32>
    %22 = vector.shape_cast %21 : vector<2x8x32xf32> to vector<16x32xf32>
    %c0_10 = arith.constant 0 : index
    %c0_11 = arith.constant 0 : index
    %c0_12 = arith.constant 0 : index
    %23 = vector.load %arg3[%c0_10, %c0_11, %c0_12] : memref<2x1x8xf32, #tpu.memory_space<vmem>>, vector<2x1x8xf32>
    %cst_13 = arith.constant -1.000000e+09 : f32
    %24 = vector.broadcast %cst_13 : f32 to vector<2x1x8xf32>
    %25 = arith.mulf %23, %24 : vector<2x1x8xf32>
    %26 = arith.truncf %22 : vector<16x32xf32> to vector<16x32xbf16>
    %c0_14 = arith.constant 0 : index
    %c0_15 = arith.constant 0 : index
    %c0_16 = arith.constant 0 : index
    %27 = vector.load %arg7[%c0_14, %c0_15, %c0_16] : memref<2x32x128xbf16, #tpu.memory_space<vmem>>, vector<1x32x128xbf16>
    %28 = vector.shape_cast %27 : vector<1x32x128xbf16> to vector<32x128xbf16>
    %cst_17 = arith.constant dense<0.000000e+00> : vector<16x128xf32>
    %29 = tpu.matmul %26, %28, %cst_17 {dimension_numbers = #tpu.dot_dimension_numbers<[1], [0], [0], [1], [0, 0, 1, 1], [], []>} : vector<16x32xbf16>, vector<32x128xbf16>, vector<16x128xf32> -> vector<16x128xf32>
    %c0_18 = arith.constant 0 : index
    %c0_19 = arith.constant 0 : index
    %c0_20 = arith.constant 0 : index
    %30 = vector.load %arg8[%c0_18, %c0_19, %c0_20] : memref<2x1x128xf32, #tpu.memory_space<vmem>>, vector<1x1x128xf32>
    %31 = vector.shape_cast %30 : vector<1x1x128xf32> to vector<1x128xf32>
    %32 = vector.broadcast %31 : vector<1x128xf32> to vector<16x128xf32>
    %33 = arith.addf %29, %32 : vector<16x128xf32>
    %34 = vector.extract_strided_slice %33 {offsets = [0, 0], sizes = [8, 128], strides = [1, 1]} : vector<16x128xf32> to vector<8x128xf32>
    %35 = tpu.transpose %34, [1, 0] : vector<8x128xf32> -> vector<128x8xf32>
    %36 = vector.extract_strided_slice %35 {offsets = [0, 0], sizes = [32, 8], strides = [1, 1]} : vector<128x8xf32> to vector<32x8xf32>
    %37 = vector.shape_cast %36 : vector<32x8xf32> to vector<4x8x8xf32>
    %38 = vector.extract_strided_slice %35 {offsets = [32, 0], sizes = [32, 8], strides = [1, 1]} : vector<128x8xf32> to vector<32x8xf32>
    %39 = vector.shape_cast %38 : vector<32x8xf32> to vector<4x8x8xf32>
    %40 = vector.extract_strided_slice %35 {offsets = [64, 0], sizes = [32, 8], strides = [1, 1]} : vector<128x8xf32> to vector<32x8xf32>
    %41 = vector.shape_cast %40 : vector<32x8xf32> to vector<4x8x8xf32>
    %cst_21 = arith.constant dense<0.000000e+00> : vector<4x8x8xf32>
    %42 = tpu.matmul %37, %39, %cst_21 {dimension_numbers = #tpu.dot_dimension_numbers<[1], [1], [2], [2], [0, 0, 0, 2, 1, 2], [0], [0]>} : vector<4x8x8xf32>, vector<4x8x8xf32>, vector<4x8x8xf32> -> vector<4x8x8xf32>
    %cst_22 = arith.constant 0.176776692 : f32
    %43 = vector.broadcast %cst_22 : f32 to vector<4x8x8xf32>
    %44 = arith.mulf %42, %43 : vector<4x8x8xf32>
    %45 = vector.extract_strided_slice %25 {offsets = [0, 0, 0], sizes = [1, 1, 8], strides = [1, 1, 1]} : vector<2x1x8xf32> to vector<1x1x8xf32>
    %46 = vector.shape_cast %45 : vector<1x1x8xf32> to vector<1x8xf32>
    %47 = vector.shape_cast %46 : vector<1x8xf32> to vector<1x1x8xf32>
    %48 = vector.broadcast %47 : vector<1x1x8xf32> to vector<4x8x8xf32>
    %49 = arith.addf %44, %48 : vector<4x8x8xf32>
    %cst_23 = arith.constant dense<0xFF800000> : vector<4x8xf32>
    %50 = vector.multi_reduction <maximumf>, %49, %cst_23 [2] : vector<4x8x8xf32> to vector<4x8xf32>
    %51 = vector.shape_cast %50 : vector<4x8xf32> to vector<4x8x1xf32>
    %52 = vector.broadcast %51 : vector<4x8x1xf32> to vector<4x8x8xf32>
    %53 = arith.subf %49, %52 : vector<4x8x8xf32>
    %54 = math.exp %53 : vector<4x8x8xf32>
    %cst_24 = arith.constant dense<0.000000e+00> : vector<4x8xf32>
    %55 = vector.multi_reduction <add>, %54, %cst_24 [2] : vector<4x8x8xf32> to vector<4x8xf32>
    %56 = vector.shape_cast %55 : vector<4x8xf32> to vector<4x8x1xf32>
    %57 = tpu.reciprocal %56 {approx = true} : vector<4x8x1xf32> -> vector<4x8x1xf32>
    %58 = vector.broadcast %57 : vector<4x8x1xf32> to vector<4x8x8xf32>
    %59 = arith.mulf %54, %58 : vector<4x8x8xf32>
    %cst_25 = arith.constant dense<0.000000e+00> : vector<4x8x8xf32>
    %60 = tpu.matmul %41, %59, %cst_25 {dimension_numbers = #tpu.dot_dimension_numbers<[2], [2], [1], [1], [0, 0, 0, 1, 1, 1], [0], [0]>} : vector<4x8x8xf32>, vector<4x8x8xf32>, vector<4x8x8xf32> -> vector<4x8x8xf32>
    %61 = vector.shape_cast %60 : vector<4x8x8xf32> to vector<32x8xf32>
    %62 = vector.extract_strided_slice %33 {offsets = [8, 0], sizes = [8, 128], strides = [1, 1]} : vector<16x128xf32> to vector<8x128xf32>
    %63 = tpu.transpose %62, [1, 0] : vector<8x128xf32> -> vector<128x8xf32>
    %64 = vector.extract_strided_slice %63 {offsets = [0, 0], sizes = [32, 8], strides = [1, 1]} : vector<128x8xf32> to vector<32x8xf32>
    %65 = vector.shape_cast %64 : vector<32x8xf32> to vector<4x8x8xf32>
    %66 = vector.extract_strided_slice %63 {offsets = [32, 0], sizes = [32, 8], strides = [1, 1]} : vector<128x8xf32> to vector<32x8xf32>
    %67 = vector.shape_cast %66 : vector<32x8xf32> to vector<4x8x8xf32>
    %68 = vector.extract_strided_slice %63 {offsets = [64, 0], sizes = [32, 8], strides = [1, 1]} : vector<128x8xf32> to vector<32x8xf32>
    %69 = vector.shape_cast %68 : vector<32x8xf32> to vector<4x8x8xf32>
    %cst_26 = arith.constant dense<0.000000e+00> : vector<4x8x8xf32>
    %70 = tpu.matmul %65, %67, %cst_26 {dimension_numbers = #tpu.dot_dimension_numbers<[1], [1], [2], [2], [0, 0, 0, 2, 1, 2], [0], [0]>} : vector<4x8x8xf32>, vector<4x8x8xf32>, vector<4x8x8xf32> -> vector<4x8x8xf32>
    %cst_27 = arith.constant 0.176776692 : f32
    %71 = vector.broadcast %cst_27 : f32 to vector<4x8x8xf32>
    %72 = arith.mulf %70, %71 : vector<4x8x8xf32>
    %73 = vector.extract_strided_slice %25 {offsets = [1, 0, 0], sizes = [1, 1, 8], strides = [1, 1, 1]} : vector<2x1x8xf32> to vector<1x1x8xf32>
    %74 = vector.shape_cast %73 : vector<1x1x8xf32> to vector<1x8xf32>
    %75 = vector.shape_cast %74 : vector<1x8xf32> to vector<1x1x8xf32>
    %76 = vector.broadcast %75 : vector<1x1x8xf32> to vector<4x8x8xf32>
    %77 = arith.addf %72, %76 : vector<4x8x8xf32>
    %cst_28 = arith.constant dense<0xFF800000> : vector<4x8xf32>
    %78 = vector.multi_reduction <maximumf>, %77, %cst_28 [2] : vector<4x8x8xf32> to vector<4x8xf32>
    %79 = vector.shape_cast %78 : vector<4x8xf32> to vector<4x8x1xf32>
    %80 = vector.broadcast %79 : vector<4x8x1xf32> to vector<4x8x8xf32>
    %81 = arith.subf %77, %80 : vector<4x8x8xf32>
    %82 = math.exp %81 : vector<4x8x8xf32>
    %cst_29 = arith.constant dense<0.000000e+00> : vector<4x8xf32>
    %83 = vector.multi_reduction <add>, %82, %cst_29 [2] : vector<4x8x8xf32> to vector<4x8xf32>
    %84 = vector.shape_cast %83 : vector<4x8xf32> to vector<4x8x1xf32>
    %85 = tpu.reciprocal %84 {approx = true} : vector<4x8x1xf32> -> vector<4x8x1xf32>
    %86 = vector.broadcast %85 : vector<4x8x1xf32> to vector<4x8x8xf32>
    %87 = arith.mulf %82, %86 : vector<4x8x8xf32>
    %cst_30 = arith.constant dense<0.000000e+00> : vector<4x8x8xf32>
    %88 = tpu.matmul %69, %87, %cst_30 {dimension_numbers = #tpu.dot_dimension_numbers<[2], [2], [1], [1], [0, 0, 0, 1, 1, 1], [0], [0]>} : vector<4x8x8xf32>, vector<4x8x8xf32>, vector<4x8x8xf32> -> vector<4x8x8xf32>
    %89 = vector.shape_cast %88 : vector<4x8x8xf32> to vector<32x8xf32>
    %90 = tpu.concatenate %61, %89 in 1 : vector<32x8xf32>, vector<32x8xf32> -> vector<32x16xf32>
    %91 = arith.truncf %90 : vector<32x16xf32> to vector<32x16xbf16>
    %c0_31 = arith.constant 0 : index
    %c0_32 = arith.constant 0 : index
    %c0_33 = arith.constant 0 : index
    %92 = vector.load %arg9[%c0_31, %c0_32, %c0_33] : memref<2x32x32xbf16, #tpu.memory_space<vmem>>, vector<1x32x32xbf16>
    %93 = vector.shape_cast %92 : vector<1x32x32xbf16> to vector<32x32xbf16>
    %cst_34 = arith.constant dense<0.000000e+00> : vector<16x32xf32>
    %94 = tpu.matmul %91, %93, %cst_34 {dimension_numbers = #tpu.dot_dimension_numbers<[0], [0], [1], [1], [0, 1, 1, 1], [], []>} : vector<32x16xbf16>, vector<32x32xbf16>, vector<16x32xf32> -> vector<16x32xf32>
    %c0_35 = arith.constant 0 : index
    %c0_36 = arith.constant 0 : index
    %c0_37 = arith.constant 0 : index
    %95 = vector.load %arg10[%c0_35, %c0_36, %c0_37] : memref<2x1x32xf32, #tpu.memory_space<vmem>>, vector<1x1x32xf32>
    %96 = vector.shape_cast %95 : vector<1x1x32xf32> to vector<1x32xf32>
    %97 = vector.broadcast %96 : vector<1x32xf32> to vector<16x32xf32>
    %98 = arith.addf %94, %97 : vector<16x32xf32>
    %99 = arith.addf %22, %98 : vector<16x32xf32>
    %cst_38 = arith.constant dense<0.000000e+00> : vector<16xf32>
    %100 = vector.multi_reduction <add>, %99, %cst_38 [1] : vector<16x32xf32> to vector<16xf32>
    %101 = vector.shape_cast %100 : vector<16xf32> to vector<16x1xf32>
    %cst_39 = arith.constant 3.200000e+01 : f32
    %102 = vector.broadcast %cst_39 : f32 to vector<16x1xf32>
    %103 = arith.divf %101, %102 : vector<16x1xf32>
    %104 = vector.broadcast %103 : vector<16x1xf32> to vector<16x32xf32>
    %105 = arith.subf %99, %104 : vector<16x32xf32>
    %106 = arith.mulf %105, %105 : vector<16x32xf32>
    %cst_40 = arith.constant dense<0.000000e+00> : vector<16xf32>
    %107 = vector.multi_reduction <add>, %106, %cst_40 [1] : vector<16x32xf32> to vector<16xf32>
    %108 = vector.shape_cast %107 : vector<16xf32> to vector<16x1xf32>
    %cst_41 = arith.constant 3.200000e+01 : f32
    %109 = vector.broadcast %cst_41 : f32 to vector<16x1xf32>
    %110 = arith.divf %108, %109 : vector<16x1xf32>
    %111 = vector.broadcast %103 : vector<16x1xf32> to vector<16x32xf32>
    %112 = arith.subf %99, %111 : vector<16x32xf32>
    %cst_42 = arith.constant 9.99999974E-6 : f32
    %113 = vector.broadcast %cst_42 : f32 to vector<16x1xf32>
    %114 = arith.addf %110, %113 : vector<16x1xf32>
    %115 = math.rsqrt %114 : vector<16x1xf32>
    %116 = vector.broadcast %115 : vector<16x1xf32> to vector<16x32xf32>
    %117 = arith.mulf %112, %116 : vector<16x32xf32>
    %c0_43 = arith.constant 0 : index
    %c0_44 = arith.constant 0 : index
    %c0_45 = arith.constant 0 : index
    %118 = vector.load %arg11[%c0_43, %c0_44, %c0_45] : memref<2x1x32xf32, #tpu.memory_space<vmem>>, vector<1x1x32xf32>
    %119 = vector.shape_cast %118 : vector<1x1x32xf32> to vector<1x32xf32>
    %120 = vector.broadcast %119 : vector<1x32xf32> to vector<16x32xf32>
    %121 = arith.mulf %117, %120 : vector<16x32xf32>
    %c0_46 = arith.constant 0 : index
    %c0_47 = arith.constant 0 : index
    %c0_48 = arith.constant 0 : index
    %122 = vector.load %arg12[%c0_46, %c0_47, %c0_48] : memref<2x1x32xf32, #tpu.memory_space<vmem>>, vector<1x1x32xf32>
    %123 = vector.shape_cast %122 : vector<1x1x32xf32> to vector<1x32xf32>
    %124 = vector.broadcast %123 : vector<1x32xf32> to vector<16x32xf32>
    %125 = arith.addf %121, %124 : vector<16x32xf32>
    %126 = arith.truncf %125 : vector<16x32xf32> to vector<16x32xbf16>
    %c0_49 = arith.constant 0 : index
    %c0_50 = arith.constant 0 : index
    %c0_51 = arith.constant 0 : index
    %127 = vector.load %arg13[%c0_49, %c0_50, %c0_51] : memref<2x32x64xbf16, #tpu.memory_space<vmem>>, vector<1x32x64xbf16>
    %128 = vector.shape_cast %127 : vector<1x32x64xbf16> to vector<32x64xbf16>
    %cst_52 = arith.constant dense<0.000000e+00> : vector<16x64xf32>
    %129 = tpu.matmul %126, %128, %cst_52 {dimension_numbers = #tpu.dot_dimension_numbers<[1], [0], [0], [1], [0, 0, 1, 1], [], []>} : vector<16x32xbf16>, vector<32x64xbf16>, vector<16x64xf32> -> vector<16x64xf32>
    %c0_53 = arith.constant 0 : index
    %c0_54 = arith.constant 0 : index
    %c0_55 = arith.constant 0 : index
    %130 = vector.load %arg14[%c0_53, %c0_54, %c0_55] : memref<2x1x64xf32, #tpu.memory_space<vmem>>, vector<1x1x64xf32>
    %131 = vector.shape_cast %130 : vector<1x1x64xf32> to vector<1x64xf32>
    %132 = vector.broadcast %131 : vector<1x64xf32> to vector<16x64xf32>
    %133 = arith.addf %129, %132 : vector<16x64xf32>
    %cst_56 = arith.constant 0.000000e+00 : f32
    %134 = vector.broadcast %cst_56 : f32 to vector<16x64xf32>
    %135 = arith.maximumf %133, %134 : vector<16x64xf32>
    %136 = arith.truncf %135 : vector<16x64xf32> to vector<16x64xbf16>
    %c0_57 = arith.constant 0 : index
    %c0_58 = arith.constant 0 : index
    %c0_59 = arith.constant 0 : index
    %137 = vector.load %arg15[%c0_57, %c0_58, %c0_59] : memref<2x64x32xbf16, #tpu.memory_space<vmem>>, vector<1x64x32xbf16>
    %138 = vector.shape_cast %137 : vector<1x64x32xbf16> to vector<64x32xbf16>
    %cst_60 = arith.constant dense<0.000000e+00> : vector<16x32xf32>
    %139 = tpu.matmul %136, %138, %cst_60 {dimension_numbers = #tpu.dot_dimension_numbers<[1], [0], [0], [1], [0, 0, 1, 1], [], []>} : vector<16x64xbf16>, vector<64x32xbf16>, vector<16x32xf32> -> vector<16x32xf32>
    %c0_61 = arith.constant 0 : index
    %c0_62 = arith.constant 0 : index
    %c0_63 = arith.constant 0 : index
    %140 = vector.load %arg16[%c0_61, %c0_62, %c0_63] : memref<2x1x32xf32, #tpu.memory_space<vmem>>, vector<1x1x32xf32>
    %141 = vector.shape_cast %140 : vector<1x1x32xf32> to vector<1x32xf32>
    %142 = vector.broadcast %141 : vector<1x32xf32> to vector<16x32xf32>
    %143 = arith.addf %139, %142 : vector<16x32xf32>
    %144 = arith.addf %125, %143 : vector<16x32xf32>
    %cst_64 = arith.constant dense<0.000000e+00> : vector<16xf32>
    %145 = vector.multi_reduction <add>, %144, %cst_64 [1] : vector<16x32xf32> to vector<16xf32>
    %146 = vector.shape_cast %145 : vector<16xf32> to vector<16x1xf32>
    %cst_65 = arith.constant 3.200000e+01 : f32
    %147 = vector.broadcast %cst_65 : f32 to vector<16x1xf32>
    %148 = arith.divf %146, %147 : vector<16x1xf32>
    %149 = vector.broadcast %148 : vector<16x1xf32> to vector<16x32xf32>
    %150 = arith.subf %144, %149 : vector<16x32xf32>
    %151 = arith.mulf %150, %150 : vector<16x32xf32>
    %cst_66 = arith.constant dense<0.000000e+00> : vector<16xf32>
    %152 = vector.multi_reduction <add>, %151, %cst_66 [1] : vector<16x32xf32> to vector<16xf32>
    %153 = vector.shape_cast %152 : vector<16xf32> to vector<16x1xf32>
    %cst_67 = arith.constant 3.200000e+01 : f32
    %154 = vector.broadcast %cst_67 : f32 to vector<16x1xf32>
    %155 = arith.divf %153, %154 : vector<16x1xf32>
    %156 = vector.broadcast %148 : vector<16x1xf32> to vector<16x32xf32>
    %157 = arith.subf %144, %156 : vector<16x32xf32>
    %cst_68 = arith.constant 9.99999974E-6 : f32
    %158 = vector.broadcast %cst_68 : f32 to vector<16x1xf32>
    %159 = arith.addf %155, %158 : vector<16x1xf32>
    %160 = math.rsqrt %159 : vector<16x1xf32>
    %161 = vector.broadcast %160 : vector<16x1xf32> to vector<16x32xf32>
    %162 = arith.mulf %157, %161 : vector<16x32xf32>
    %c0_69 = arith.constant 0 : index
    %c0_70 = arith.constant 0 : index
    %c0_71 = arith.constant 0 : index
    %163 = vector.load %arg17[%c0_69, %c0_70, %c0_71] : memref<2x1x32xf32, #tpu.memory_space<vmem>>, vector<1x1x32xf32>
    %164 = vector.shape_cast %163 : vector<1x1x32xf32> to vector<1x32xf32>
    %165 = vector.broadcast %164 : vector<1x32xf32> to vector<16x32xf32>
    %166 = arith.mulf %162, %165 : vector<16x32xf32>
    %c0_72 = arith.constant 0 : index
    %c0_73 = arith.constant 0 : index
    %c0_74 = arith.constant 0 : index
    %167 = vector.load %arg18[%c0_72, %c0_73, %c0_74] : memref<2x1x32xf32, #tpu.memory_space<vmem>>, vector<1x1x32xf32>
    %168 = vector.shape_cast %167 : vector<1x1x32xf32> to vector<1x32xf32>
    %169 = vector.broadcast %168 : vector<1x32xf32> to vector<16x32xf32>
    %170 = arith.addf %166, %169 : vector<16x32xf32>
    %171 = arith.truncf %170 : vector<16x32xf32> to vector<16x32xbf16>
    %c1 = arith.constant 1 : index
    %c0_75 = arith.constant 0 : index
    %c0_76 = arith.constant 0 : index
    %172 = vector.load %arg7[%c1, %c0_75, %c0_76] : memref<2x32x128xbf16, #tpu.memory_space<vmem>>, vector<1x32x128xbf16>
    %173 = vector.shape_cast %172 : vector<1x32x128xbf16> to vector<32x128xbf16>
    %cst_77 = arith.constant dense<0.000000e+00> : vector<16x128xf32>
    %174 = tpu.matmul %171, %173, %cst_77 {dimension_numbers = #tpu.dot_dimension_numbers<[1], [0], [0], [1], [0, 0, 1, 1], [], []>} : vector<16x32xbf16>, vector<32x128xbf16>, vector<16x128xf32> -> vector<16x128xf32>
    %c1_78 = arith.constant 1 : index
    %c0_79 = arith.constant 0 : index
    %c0_80 = arith.constant 0 : index
    %175 = vector.load %arg8[%c1_78, %c0_79, %c0_80] : memref<2x1x128xf32, #tpu.memory_space<vmem>>, vector<1x1x128xf32>
    %176 = vector.shape_cast %175 : vector<1x1x128xf32> to vector<1x128xf32>
    %177 = vector.broadcast %176 : vector<1x128xf32> to vector<16x128xf32>
    %178 = arith.addf %174, %177 : vector<16x128xf32>
    %179 = vector.extract_strided_slice %178 {offsets = [0, 0], sizes = [8, 128], strides = [1, 1]} : vector<16x128xf32> to vector<8x128xf32>
    %180 = tpu.transpose %179, [1, 0] : vector<8x128xf32> -> vector<128x8xf32>
    %181 = vector.extract_strided_slice %180 {offsets = [0, 0], sizes = [32, 8], strides = [1, 1]} : vector<128x8xf32> to vector<32x8xf32>
    %182 = vector.shape_cast %181 : vector<32x8xf32> to vector<4x8x8xf32>
    %183 = vector.extract_strided_slice %180 {offsets = [32, 0], sizes = [32, 8], strides = [1, 1]} : vector<128x8xf32> to vector<32x8xf32>
    %184 = vector.shape_cast %183 : vector<32x8xf32> to vector<4x8x8xf32>
    %185 = vector.extract_strided_slice %180 {offsets = [64, 0], sizes = [32, 8], strides = [1, 1]} : vector<128x8xf32> to vector<32x8xf32>
    %186 = vector.shape_cast %185 : vector<32x8xf32> to vector<4x8x8xf32>
    %cst_81 = arith.constant dense<0.000000e+00> : vector<4x8x8xf32>
    %187 = tpu.matmul %182, %184, %cst_81 {dimension_numbers = #tpu.dot_dimension_numbers<[1], [1], [2], [2], [0, 0, 0, 2, 1, 2], [0], [0]>} : vector<4x8x8xf32>, vector<4x8x8xf32>, vector<4x8x8xf32> -> vector<4x8x8xf32>
    %cst_82 = arith.constant 0.176776692 : f32
    %188 = vector.broadcast %cst_82 : f32 to vector<4x8x8xf32>
    %189 = arith.mulf %187, %188 : vector<4x8x8xf32>
    %190 = vector.extract_strided_slice %25 {offsets = [0, 0, 0], sizes = [1, 1, 8], strides = [1, 1, 1]} : vector<2x1x8xf32> to vector<1x1x8xf32>
    %191 = vector.shape_cast %190 : vector<1x1x8xf32> to vector<1x8xf32>
    %192 = vector.shape_cast %191 : vector<1x8xf32> to vector<1x1x8xf32>
    %193 = vector.broadcast %192 : vector<1x1x8xf32> to vector<4x8x8xf32>
    %194 = arith.addf %189, %193 : vector<4x8x8xf32>
    %cst_83 = arith.constant dense<0xFF800000> : vector<4x8xf32>
    %195 = vector.multi_reduction <maximumf>, %194, %cst_83 [2] : vector<4x8x8xf32> to vector<4x8xf32>
    %196 = vector.shape_cast %195 : vector<4x8xf32> to vector<4x8x1xf32>
    %197 = vector.broadcast %196 : vector<4x8x1xf32> to vector<4x8x8xf32>
    %198 = arith.subf %194, %197 : vector<4x8x8xf32>
    %199 = math.exp %198 : vector<4x8x8xf32>
    %cst_84 = arith.constant dense<0.000000e+00> : vector<4x8xf32>
    %200 = vector.multi_reduction <add>, %199, %cst_84 [2] : vector<4x8x8xf32> to vector<4x8xf32>
    %201 = vector.shape_cast %200 : vector<4x8xf32> to vector<4x8x1xf32>
    %202 = tpu.reciprocal %201 {approx = true} : vector<4x8x1xf32> -> vector<4x8x1xf32>
    %203 = vector.broadcast %202 : vector<4x8x1xf32> to vector<4x8x8xf32>
    %204 = arith.mulf %199, %203 : vector<4x8x8xf32>
    %cst_85 = arith.constant dense<0.000000e+00> : vector<4x8x8xf32>
    %205 = tpu.matmul %186, %204, %cst_85 {dimension_numbers = #tpu.dot_dimension_numbers<[2], [2], [1], [1], [0, 0, 0, 1, 1, 1], [0], [0]>} : vector<4x8x8xf32>, vector<4x8x8xf32>, vector<4x8x8xf32> -> vector<4x8x8xf32>
    %206 = vector.shape_cast %205 : vector<4x8x8xf32> to vector<32x8xf32>
    %207 = vector.extract_strided_slice %178 {offsets = [8, 0], sizes = [8, 128], strides = [1, 1]} : vector<16x128xf32> to vector<8x128xf32>
    %208 = tpu.transpose %207, [1, 0] : vector<8x128xf32> -> vector<128x8xf32>
    %209 = vector.extract_strided_slice %208 {offsets = [0, 0], sizes = [32, 8], strides = [1, 1]} : vector<128x8xf32> to vector<32x8xf32>
    %210 = vector.shape_cast %209 : vector<32x8xf32> to vector<4x8x8xf32>
    %211 = vector.extract_strided_slice %208 {offsets = [32, 0], sizes = [32, 8], strides = [1, 1]} : vector<128x8xf32> to vector<32x8xf32>
    %212 = vector.shape_cast %211 : vector<32x8xf32> to vector<4x8x8xf32>
    %213 = vector.extract_strided_slice %208 {offsets = [64, 0], sizes = [32, 8], strides = [1, 1]} : vector<128x8xf32> to vector<32x8xf32>
    %214 = vector.shape_cast %213 : vector<32x8xf32> to vector<4x8x8xf32>
    %cst_86 = arith.constant dense<0.000000e+00> : vector<4x8x8xf32>
    %215 = tpu.matmul %210, %212, %cst_86 {dimension_numbers = #tpu.dot_dimension_numbers<[1], [1], [2], [2], [0, 0, 0, 2, 1, 2], [0], [0]>} : vector<4x8x8xf32>, vector<4x8x8xf32>, vector<4x8x8xf32> -> vector<4x8x8xf32>
    %cst_87 = arith.constant 0.176776692 : f32
    %216 = vector.broadcast %cst_87 : f32 to vector<4x8x8xf32>
    %217 = arith.mulf %215, %216 : vector<4x8x8xf32>
    %218 = vector.extract_strided_slice %25 {offsets = [1, 0, 0], sizes = [1, 1, 8], strides = [1, 1, 1]} : vector<2x1x8xf32> to vector<1x1x8xf32>
    %219 = vector.shape_cast %218 : vector<1x1x8xf32> to vector<1x8xf32>
    %220 = vector.shape_cast %219 : vector<1x8xf32> to vector<1x1x8xf32>
    %221 = vector.broadcast %220 : vector<1x1x8xf32> to vector<4x8x8xf32>
    %222 = arith.addf %217, %221 : vector<4x8x8xf32>
    %cst_88 = arith.constant dense<0xFF800000> : vector<4x8xf32>
    %223 = vector.multi_reduction <maximumf>, %222, %cst_88 [2] : vector<4x8x8xf32> to vector<4x8xf32>
    %224 = vector.shape_cast %223 : vector<4x8xf32> to vector<4x8x1xf32>
    %225 = vector.broadcast %224 : vector<4x8x1xf32> to vector<4x8x8xf32>
    %226 = arith.subf %222, %225 : vector<4x8x8xf32>
    %227 = math.exp %226 : vector<4x8x8xf32>
    %cst_89 = arith.constant dense<0.000000e+00> : vector<4x8xf32>
    %228 = vector.multi_reduction <add>, %227, %cst_89 [2] : vector<4x8x8xf32> to vector<4x8xf32>
    %229 = vector.shape_cast %228 : vector<4x8xf32> to vector<4x8x1xf32>
    %230 = tpu.reciprocal %229 {approx = true} : vector<4x8x1xf32> -> vector<4x8x1xf32>
    %231 = vector.broadcast %230 : vector<4x8x1xf32> to vector<4x8x8xf32>
    %232 = arith.mulf %227, %231 : vector<4x8x8xf32>
    %cst_90 = arith.constant dense<0.000000e+00> : vector<4x8x8xf32>
    %233 = tpu.matmul %214, %232, %cst_90 {dimension_numbers = #tpu.dot_dimension_numbers<[2], [2], [1], [1], [0, 0, 0, 1, 1, 1], [0], [0]>} : vector<4x8x8xf32>, vector<4x8x8xf32>, vector<4x8x8xf32> -> vector<4x8x8xf32>
    %234 = vector.shape_cast %233 : vector<4x8x8xf32> to vector<32x8xf32>
    %235 = tpu.concatenate %206, %234 in 1 : vector<32x8xf32>, vector<32x8xf32> -> vector<32x16xf32>
    %236 = arith.truncf %235 : vector<32x16xf32> to vector<32x16xbf16>
    %c1_91 = arith.constant 1 : index
    %c0_92 = arith.constant 0 : index
    %c0_93 = arith.constant 0 : index
    %237 = vector.load %arg9[%c1_91, %c0_92, %c0_93] : memref<2x32x32xbf16, #tpu.memory_space<vmem>>, vector<1x32x32xbf16>
    %238 = vector.shape_cast %237 : vector<1x32x32xbf16> to vector<32x32xbf16>
    %cst_94 = arith.constant dense<0.000000e+00> : vector<16x32xf32>
    %239 = tpu.matmul %236, %238, %cst_94 {dimension_numbers = #tpu.dot_dimension_numbers<[0], [0], [1], [1], [0, 1, 1, 1], [], []>} : vector<32x16xbf16>, vector<32x32xbf16>, vector<16x32xf32> -> vector<16x32xf32>
    %c1_95 = arith.constant 1 : index
    %c0_96 = arith.constant 0 : index
    %c0_97 = arith.constant 0 : index
    %240 = vector.load %arg10[%c1_95, %c0_96, %c0_97] : memref<2x1x32xf32, #tpu.memory_space<vmem>>, vector<1x1x32xf32>
    %241 = vector.shape_cast %240 : vector<1x1x32xf32> to vector<1x32xf32>
    %242 = vector.broadcast %241 : vector<1x32xf32> to vector<16x32xf32>
    %243 = arith.addf %239, %242 : vector<16x32xf32>
    %244 = arith.addf %170, %243 : vector<16x32xf32>
    %cst_98 = arith.constant dense<0.000000e+00> : vector<16xf32>
    %245 = vector.multi_reduction <add>, %244, %cst_98 [1] : vector<16x32xf32> to vector<16xf32>
    %246 = vector.shape_cast %245 : vector<16xf32> to vector<16x1xf32>
    %cst_99 = arith.constant 3.200000e+01 : f32
    %247 = vector.broadcast %cst_99 : f32 to vector<16x1xf32>
    %248 = arith.divf %246, %247 : vector<16x1xf32>
    %249 = vector.broadcast %248 : vector<16x1xf32> to vector<16x32xf32>
    %250 = arith.subf %244, %249 : vector<16x32xf32>
    %251 = arith.mulf %250, %250 : vector<16x32xf32>
    %cst_100 = arith.constant dense<0.000000e+00> : vector<16xf32>
    %252 = vector.multi_reduction <add>, %251, %cst_100 [1] : vector<16x32xf32> to vector<16xf32>
    %253 = vector.shape_cast %252 : vector<16xf32> to vector<16x1xf32>
    %cst_101 = arith.constant 3.200000e+01 : f32
    %254 = vector.broadcast %cst_101 : f32 to vector<16x1xf32>
    %255 = arith.divf %253, %254 : vector<16x1xf32>
    %256 = vector.broadcast %248 : vector<16x1xf32> to vector<16x32xf32>
    %257 = arith.subf %244, %256 : vector<16x32xf32>
    %cst_102 = arith.constant 9.99999974E-6 : f32
    %258 = vector.broadcast %cst_102 : f32 to vector<16x1xf32>
    %259 = arith.addf %255, %258 : vector<16x1xf32>
    %260 = math.rsqrt %259 : vector<16x1xf32>
    %261 = vector.broadcast %260 : vector<16x1xf32> to vector<16x32xf32>
    %262 = arith.mulf %257, %261 : vector<16x32xf32>
    %c1_103 = arith.constant 1 : index
    %c0_104 = arith.constant 0 : index
    %c0_105 = arith.constant 0 : index
    %263 = vector.load %arg11[%c1_103, %c0_104, %c0_105] : memref<2x1x32xf32, #tpu.memory_space<vmem>>, vector<1x1x32xf32>
    %264 = vector.shape_cast %263 : vector<1x1x32xf32> to vector<1x32xf32>
    %265 = vector.broadcast %264 : vector<1x32xf32> to vector<16x32xf32>
    %266 = arith.mulf %262, %265 : vector<16x32xf32>
    %c1_106 = arith.constant 1 : index
    %c0_107 = arith.constant 0 : index
    %c0_108 = arith.constant 0 : index
    %267 = vector.load %arg12[%c1_106, %c0_107, %c0_108] : memref<2x1x32xf32, #tpu.memory_space<vmem>>, vector<1x1x32xf32>
    %268 = vector.shape_cast %267 : vector<1x1x32xf32> to vector<1x32xf32>
    %269 = vector.broadcast %268 : vector<1x32xf32> to vector<16x32xf32>
    %270 = arith.addf %266, %269 : vector<16x32xf32>
    %271 = arith.truncf %270 : vector<16x32xf32> to vector<16x32xbf16>
    %c1_109 = arith.constant 1 : index
    %c0_110 = arith.constant 0 : index
    %c0_111 = arith.constant 0 : index
    %272 = vector.load %arg13[%c1_109, %c0_110, %c0_111] : memref<2x32x64xbf16, #tpu.memory_space<vmem>>, vector<1x32x64xbf16>
    %273 = vector.shape_cast %272 : vector<1x32x64xbf16> to vector<32x64xbf16>
    %cst_112 = arith.constant dense<0.000000e+00> : vector<16x64xf32>
    %274 = tpu.matmul %271, %273, %cst_112 {dimension_numbers = #tpu.dot_dimension_numbers<[1], [0], [0], [1], [0, 0, 1, 1], [], []>} : vector<16x32xbf16>, vector<32x64xbf16>, vector<16x64xf32> -> vector<16x64xf32>
    %c1_113 = arith.constant 1 : index
    %c0_114 = arith.constant 0 : index
    %c0_115 = arith.constant 0 : index
    %275 = vector.load %arg14[%c1_113, %c0_114, %c0_115] : memref<2x1x64xf32, #tpu.memory_space<vmem>>, vector<1x1x64xf32>
    %276 = vector.shape_cast %275 : vector<1x1x64xf32> to vector<1x64xf32>
    %277 = vector.broadcast %276 : vector<1x64xf32> to vector<16x64xf32>
    %278 = arith.addf %274, %277 : vector<16x64xf32>
    %cst_116 = arith.constant 0.000000e+00 : f32
    %279 = vector.broadcast %cst_116 : f32 to vector<16x64xf32>
    %280 = arith.maximumf %278, %279 : vector<16x64xf32>
    %281 = arith.truncf %280 : vector<16x64xf32> to vector<16x64xbf16>
    %c1_117 = arith.constant 1 : index
    %c0_118 = arith.constant 0 : index
    %c0_119 = arith.constant 0 : index
    %282 = vector.load %arg15[%c1_117, %c0_118, %c0_119] : memref<2x64x32xbf16, #tpu.memory_space<vmem>>, vector<1x64x32xbf16>
    %283 = vector.shape_cast %282 : vector<1x64x32xbf16> to vector<64x32xbf16>
    %cst_120 = arith.constant dense<0.000000e+00> : vector<16x32xf32>
    %284 = tpu.matmul %281, %283, %cst_120 {dimension_numbers = #tpu.dot_dimension_numbers<[1], [0], [0], [1], [0, 0, 1, 1], [], []>} : vector<16x64xbf16>, vector<64x32xbf16>, vector<16x32xf32> -> vector<16x32xf32>
    %c1_121 = arith.constant 1 : index
    %c0_122 = arith.constant 0 : index
    %c0_123 = arith.constant 0 : index
    %285 = vector.load %arg16[%c1_121, %c0_122, %c0_123] : memref<2x1x32xf32, #tpu.memory_space<vmem>>, vector<1x1x32xf32>
    %286 = vector.shape_cast %285 : vector<1x1x32xf32> to vector<1x32xf32>
    %287 = vector.broadcast %286 : vector<1x32xf32> to vector<16x32xf32>
    %288 = arith.addf %284, %287 : vector<16x32xf32>
    %289 = arith.addf %270, %288 : vector<16x32xf32>
    %cst_124 = arith.constant dense<0.000000e+00> : vector<16xf32>
    %290 = vector.multi_reduction <add>, %289, %cst_124 [1] : vector<16x32xf32> to vector<16xf32>
    %291 = vector.shape_cast %290 : vector<16xf32> to vector<16x1xf32>
    %cst_125 = arith.constant 3.200000e+01 : f32
    %292 = vector.broadcast %cst_125 : f32 to vector<16x1xf32>
    %293 = arith.divf %291, %292 : vector<16x1xf32>
    %294 = vector.broadcast %293 : vector<16x1xf32> to vector<16x32xf32>
    %295 = arith.subf %289, %294 : vector<16x32xf32>
    %296 = arith.mulf %295, %295 : vector<16x32xf32>
    %cst_126 = arith.constant dense<0.000000e+00> : vector<16xf32>
    %297 = vector.multi_reduction <add>, %296, %cst_126 [1] : vector<16x32xf32> to vector<16xf32>
    %298 = vector.shape_cast %297 : vector<16xf32> to vector<16x1xf32>
    %cst_127 = arith.constant 3.200000e+01 : f32
    %299 = vector.broadcast %cst_127 : f32 to vector<16x1xf32>
    %300 = arith.divf %298, %299 : vector<16x1xf32>
    %301 = vector.broadcast %293 : vector<16x1xf32> to vector<16x32xf32>
    %302 = arith.subf %289, %301 : vector<16x32xf32>
    %cst_128 = arith.constant 9.99999974E-6 : f32
    %303 = vector.broadcast %cst_128 : f32 to vector<16x1xf32>
    %304 = arith.addf %300, %303 : vector<16x1xf32>
    %305 = math.rsqrt %304 : vector<16x1xf32>
    %306 = vector.broadcast %305 : vector<16x1xf32> to vector<16x32xf32>
    %307 = arith.mulf %302, %306 : vector<16x32xf32>
    %c1_129 = arith.constant 1 : index
    %c0_130 = arith.constant 0 : index
    %c0_131 = arith.constant 0 : index
    %308 = vector.load %arg17[%c1_129, %c0_130, %c0_131] : memref<2x1x32xf32, #tpu.memory_space<vmem>>, vector<1x1x32xf32>
    %309 = vector.shape_cast %308 : vector<1x1x32xf32> to vector<1x32xf32>
    %310 = vector.broadcast %309 : vector<1x32xf32> to vector<16x32xf32>
    %311 = arith.mulf %307, %310 : vector<16x32xf32>
    %c1_132 = arith.constant 1 : index
    %c0_133 = arith.constant 0 : index
    %c0_134 = arith.constant 0 : index
    %312 = vector.load %arg18[%c1_132, %c0_133, %c0_134] : memref<2x1x32xf32, #tpu.memory_space<vmem>>, vector<1x1x32xf32>
    %313 = vector.shape_cast %312 : vector<1x1x32xf32> to vector<1x32xf32>
    %314 = vector.broadcast %313 : vector<1x32xf32> to vector<16x32xf32>
    %315 = arith.addf %311, %314 : vector<16x32xf32>
    %316 = vector.shape_cast %315 : vector<16x32xf32> to vector<2x8x32xf32>
    %317 = tpu.transpose %316, [1, 0, 2] : vector<2x8x32xf32> -> vector<8x2x32xf32>
    %c0_135 = arith.constant 0 : index
    %c0_136 = arith.constant 0 : index
    %c0_137 = arith.constant 0 : index
    %318 = vector.load %arg19[%c0_135, %c0_136, %c0_137] : memref<8x32x128xf32, #tpu.memory_space<vmem>>, vector<8x32x128xf32>
    %cst_138 = arith.constant dense<0.000000e+00> : vector<8x2x128xf32>
    %319 = tpu.matmul %317, %318, %cst_138 {dimension_numbers = #tpu.dot_dimension_numbers<[2], [1], [1], [2], [0, 0, 0, 1, 1, 2], [0], [0]>} : vector<8x2x32xf32>, vector<8x32x128xf32>, vector<8x2x128xf32> -> vector<8x2x128xf32>
    %c0_139 = arith.constant 0 : index
    %c0_140 = arith.constant 0 : index
    %c0_141 = arith.constant 0 : index
    %320 = vector.load %arg20[%c0_139, %c0_140, %c0_141] : memref<8x1x128xf32, #tpu.memory_space<vmem>>, vector<8x1x128xf32>
    %321 = vector.broadcast %320 : vector<8x1x128xf32> to vector<8x2x128xf32>
    %322 = arith.addf %319, %321 : vector<8x2x128xf32>
    %c0_142 = arith.constant 0 : index
    %c0_143 = arith.constant 0 : index
    %c0_144 = arith.constant 0 : index
    %323 = vector.load %arg21[%c0_142, %c0_143, %c0_144] : memref<8x2x128xf32, #tpu.memory_space<vmem>>, vector<8x2x128xf32>
    tpu.vector_store %arg21[%c0_142, %c0_143, %c0_144], %322 {strides = array<i32>} : memref<8x2x128xf32, #tpu.memory_space<vmem>>, vector<8x2x128xf32>,
    return
  }
  func.func @transform_0(%arg0: i32) -> (i32, i32) {
    %c0_i32 = arith.constant 0 : i32
    %c0_i32_0 = arith.constant 0 : i32
    return %arg0, %c0_i32 : i32, i32
  }
  func.func @transform_1(%arg0: i32) -> (i32, i32) {
    %c0_i32 = arith.constant 0 : i32
    %c0_i32_0 = arith.constant 0 : i32
    return %arg0, %c0_i32 : i32, i32
  }
  func.func @transform_2(%arg0: i32) -> (i32, i32, i32) {
    %c0_i32 = arith.constant 0 : i32
    %c0_i32_0 = arith.constant 0 : i32
    %c0_i32_1 = arith.constant 0 : i32
    return %arg0, %c0_i32, %c0_i32_0 : i32, i32, i32
  }
  func.func @transform_3(%arg0: i32) -> (i32, i32) {
    %c0_i32 = arith.constant 0 : i32
    %c0_i32_0 = arith.constant 0 : i32
    %c0_i32_1 = arith.constant 0 : i32
    return %c0_i32, %c0_i32_0 : i32, i32
  }
  func.func @transform_4(%arg0: i32) -> (i32, i32) {
    %c0_i32 = arith.constant 0 : i32
    %c0_i32_0 = arith.constant 0 : i32
    %c0_i32_1 = arith.constant 0 : i32
    return %c0_i32, %c0_i32_0 : i32, i32
  }
  func.func @transform_5(%arg0: i32) -> (i32, i32) {
    %c0_i32 = arith.constant 0 : i32
    %c0_i32_0 = arith.constant 0 : i32
    %c0_i32_1 = arith.constant 0 : i32
    return %c0_i32, %c0_i32_0 : i32, i32
  }
  func.func @transform_6(%arg0: i32) -> (i32, i32, i32) {
    %c0_i32 = arith.constant 0 : i32
    %c0_i32_0 = arith.constant 0 : i32
    %c0_i32_1 = arith.constant 0 : i32
    %c0_i32_2 = arith.constant 0 : i32
    return %c0_i32, %c0_i32_0, %c0_i32_1 : i32, i32, i32
  }
  func.func @transform_7(%arg0: i32) -> (i32, i32, i32) {
    %c0_i32 = arith.constant 0 : i32
    %c0_i32_0 = arith.constant 0 : i32
    %c0_i32_1 = arith.constant 0 : i32
    %c0_i32_2 = arith.constant 0 : i32
    return %c0_i32, %c0_i32_0, %c0_i32_1 : i32, i32, i32
  }
  func.func @transform_8(%arg0: i32) -> (i32, i32, i32) {
    %c0_i32 = arith.constant 0 : i32
    %c0_i32_0 = arith.constant 0 : i32
    %c0_i32_1 = arith.constant 0 : i32
    %c0_i32_2 = arith.constant 0 : i32
    return %c0_i32, %c0_i32_0, %c0_i32_1 : i32, i32, i32
  }
  func.func @transform_9(%arg0: i32) -> (i32, i32, i32) {
    %c0_i32 = arith.constant 0 : i32
    %c0_i32_0 = arith.constant 0 : i32
    %c0_i32_1 = arith.constant 0 : i32
    %c0_i32_2 = arith.constant 0 : i32
    return %c0_i32, %c0_i32_0, %c0_i32_1 : i32, i32, i32
  }
  func.func @transform_10(%arg0: i32) -> (i32, i32, i32) {
    %c0_i32 = arith.constant 0 : i32
    %c0_i32_0 = arith.constant 0 : i32
    %c0_i32_1 = arith.constant 0 : i32
    %c0_i32_2 = arith.constant 0 : i32
    return %c0_i32, %c0_i32_0, %c0_i32_1 : i32, i32, i32
  }
  func.func @transform_11(%arg0: i32) -> (i32, i32, i32) {
    %c0_i32 = arith.constant 0 : i32
    %c0_i32_0 = arith.constant 0 : i32
    %c0_i32_1 = arith.constant 0 : i32
    %c0_i32_2 = arith.constant 0 : i32
    return %c0_i32, %c0_i32_0, %c0_i32_1 : i32, i32, i32
  }
  func.func @transform_12(%arg0: i32) -> (i32, i32, i32) {
    %c0_i32 = arith.constant 0 : i32
    %c0_i32_0 = arith.constant 0 : i32
    %c0_i32_1 = arith.constant 0 : i32
    %c0_i32_2 = arith.constant 0 : i32
    return %c0_i32, %c0_i32_0, %c0_i32_1 : i32, i32, i32
  }
  func.func @transform_13(%arg0: i32) -> (i32, i32, i32) {
    %c0_i32 = arith.constant 0 : i32
    %c0_i32_0 = arith.constant 0 : i32
    %c0_i32_1 = arith.constant 0 : i32
    %c0_i32_2 = arith.constant 0 : i32
    return %c0_i32, %c0_i32_0, %c0_i32_1 : i32, i32, i32
  }
  func.func @transform_14(%arg0: i32) -> (i32, i32, i32) {
    %c0_i32 = arith.constant 0 : i32
    %c0_i32_0 = arith.constant 0 : i32
    %c0_i32_1 = arith.constant 0 : i32
    %c0_i32_2 = arith.constant 0 : i32
    return %c0_i32, %c0_i32_0, %c0_i32_1 : i32, i32, i32
  }
  func.func @transform_15(%arg0: i32) -> (i32, i32, i32) {
    %c0_i32 = arith.constant 0 : i32
    %c0_i32_0 = arith.constant 0 : i32
    %c0_i32_1 = arith.constant 0 : i32
    %c0_i32_2 = arith.constant 0 : i32
    return %c0_i32, %c0_i32_0, %c0_i32_1 : i32, i32, i32
  }
  func.func @transform_16(%arg0: i32) -> (i32, i32, i32) {
    %c0_i32 = arith.constant 0 : i32
    %c0_i32_0 = arith.constant 0 : i32
    %c0_i32_1 = arith.constant 0 : i32
    %c0_i32_2 = arith.constant 0 : i32
    return %c0_i32, %c0_i32_0, %c0_i32_1 : i32, i32, i32
  }
  func.func @transform_17(%arg0: i32) -> (i32, i32, i32) {
    %c0_i32 = arith.constant 0 : i32
    %c0_i32_0 = arith.constant 0 : i32
    %c0_i32_1 = arith.constant 0 : i32
    %c0_i32_2 = arith.constant 0 : i32
    return %c0_i32, %c0_i32_0, %c0_i32_1 : i32, i32, i32
  }
  func.func @transform_18(%arg0: i32) -> (i32, i32, i32) {
    %c0_i32 = arith.constant 0 : i32
    %c0_i32_0 = arith.constant 0 : i32
    %c0_i32_1 = arith.constant 0 : i32
    %c0_i32_2 = arith.constant 0 : i32
    return %c0_i32, %c0_i32_0, %c0_i32_1 : i32, i32, i32
  }
  func.func @transform_19(%arg0: i32) -> (i32, i32, i32) {
    %c0_i32 = arith.constant 0 : i32
    %c0_i32_0 = arith.constant 0 : i32
    %c0_i32_1 = arith.constant 0 : i32
    %c0_i32_2 = arith.constant 0 : i32
    return %c0_i32, %c0_i32_0, %c0_i32_1 : i32, i32, i32
  }
  func.func @transform_20(%arg0: i32) -> (i32, i32, i32) {
    %c0_i32 = arith.constant 0 : i32
    %c0_i32_0 = arith.constant 0 : i32
    %c0_i32_1 = arith.constant 0 : i32
    return %c0_i32, %arg0, %c0_i32_0 : i32, i32, i32
  }
}

</mosaic_0001>

<bundles_post_ra>
// kernel: tpu_custom_call.1
= control target key start
LH: loop header
LB: loop body
LE: loop exit
PB: predicated region body
PF: predicated region fallthrough
CT: control target
= control target key end

     0   :  { %s3788_s0 = inlined_call_operand.vmem [shape: s32[16,1], index: 0, kind: input, shape index: {}]   ;;  %s3789_s1 = inlined_call_operand.vmem [shape: f32[16,1], index: 1, kind: input, shape index: {}]   ;;  %s3790_s2 = inlined_call_operand.vmem [shape: f32[2,1,8], index: 2, kind: input, shape index: {}]   ;;  %s3791_s3 = inlined_call_operand.vmem [shape: f32[128,32], index: 3, kind: input, shape index: {}]   ;;  %s3792_s4 = inlined_call_operand.vmem [shape: f32[1,32], index: 4, kind: input, shape index: {}]   ;;  %s3793_s5 = inlined_call_operand.vmem [shape: f32[8,32], index: 5, kind: input, shape index: {}]   ;;  %s3794_s6 = inlined_call_operand.vmem [shape: bf16[2,32,128], index: 6, kind: input, shape index: {}]   ;;  %s3795_s7 = inlined_call_operand.vmem [shape: f32[2,1,128], index: 7, kind: input, shape index: {}]   ;;  %s3796_s8 = inlined_call_operand.vmem [shape: bf16[2,32,32], index: 8, kind: input, shape index: {}]   ;;  %s3797_s9 = inlined_call_operand.vmem [shape: f32[2,1,32], index: 9, kind: input, shape index: {}]   ;;  %s3798_s10 = inlined_call_operand.vmem [shape: f32[2,1,32], index: 10, kind: input, shape index: {}]   ;;  %s3799_s11 = inlined_call_operand.vmem [shape: f32[2,1,32], index: 11, kind: input, shape index: {}]   ;;  %s3800_s12 = inlined_call_operand.vmem [shape: bf16[2,32,64], index: 12, kind: input, shape index: {}]   ;;  %s3801_s13 = inlined_call_operand.vmem [shape: f32[2,1,64], index: 13, kind: input, shape index: {}]   ;;  %s3802_s14 = inlined_call_operand.vmem [shape: bf16[2,64,32], index: 14, kind: input, shape index: {}]   ;;  %s3803_s15 = inlined_call_operand.vmem [shape: f32[2,1,32], index: 15, kind: input, shape index: {}]   ;;  %s3804_s16 = inlined_call_operand.vmem [shape: f32[2,1,32], index: 16, kind: input, shape index: {}]   ;;  %s3805_s17 = inlined_call_operand.vmem [shape: f32[2,1,32], index: 17, kind: input, shape index: {}]   ;;  %s3806_s18 = inlined_call_operand.hbm [shape: f32[8,32,128], index: 18, kind: input, shape index: {}]   ;;  %s3807_s19 = inlined_call_operand.vmem [shape: f32[8,1,128], index: 19, kind: input, shape index: {}]   ;;  %s3808_s20 = inlined_call_operand.hbm [shape: f32[8,2,128], index: 20, kind: output, shape index: {}]  }
   0x1   :  { %3813 = sst [smem:[#allocation8_spill]] %s3788_s0 }
   0x2   :  { %3814 = sst [smem:[#allocation9_spill]] %s3789_s1 }
   0x3   :  { %3815 = sst [smem:[#allocation10_spill]] %s3790_s2 }
   0x4   :  { %3816 = sst [smem:[#allocation11_spill]] %s3791_s3 }
   0x5   :  { %3817 = sst [smem:[#allocation12_spill]] %s3792_s4 }
   0x6   :  { %25 = vsyncpa [#allocation3], 0 }
   0x7   :  { %26 = vsyncpa [#allocation4], 0  ;;  %s67_s23 = sshll.u32 %s3806_s18, 4  ;;  %s3188_s24 = smov [#allocation2]   ;;  %s68_s23 = int_to_ptr.hbm [resolvable:$true] %s67_s23 }
   0x8   :  { %s69_s2 = sshll.u32 %s3188_s24, 4  ;;  %s3189_s25 = smov 128   ;;  %s70_s2 = int_to_ptr.vmem [resolvable:$true] %s69_s2 }
   0x9   :  { %s3190_s3 = smov 8  }
   0xa   :  { %75 = dma.hbm_to_vmem [thread:$0]  %s68_s23, 4096, %s70_s2, [#allocation3], %s3189_s25, %s3189_s25, %s3190_s3  }
   0xb   :  { %3184 = dma.done.wait [#allocation3], 4096  }
   0xc   :  { %3185 = vsyncadd [#allocation3], 4294963200  ;;  %v3191_v0 = vmov 0   ;;  %s3818_s28 = sld [smem:[#allocation8_spill]]  ;;  %v83_v23 = vlaneseq  ;;  %v3192_v26 = vmov 1.0   ;;  %v2976_v28 = vld [vmem:[%s3794_s6 + $0x8] sm:$0xff] }
   0xd   :  { %3007 = vset.pattern.permute.xlu0 %v3191_v0  ;;  %3008 = vset.pattern.permute.xlu1 %v3191_v0  ;;  %s3819_s18 = sld [smem:[#allocation11_spill]]  ;;  %v2975_v29 = vld [vmem:[%s3794_s6] sm:$0xff]  ;;  %vm186_vm6 = vcmask 261120   ;;  %vm268_vm7 = vcmask 64512   ;;  %vm1244_vm15 = vcmask 523264   ;;  %s3197_s26 = smov 32  }
   0xe   :  { %s3820_s24 = sld [smem:[#allocation9_spill]]  ;;  %v84_v24 = vand.u32 127, %v83_v23  ;;  %196 = vmatpush.bf16.msra.mxu1 %v2976_v28  ;;  %v158_v35 = vld [vmem:[%s3793_s5] sm:$0xff]  ;;  %s3198_s27 = smov 2  }
   0xf   :  { %s3821_s0 = sld [smem:[#allocation12_spill]]  ;;  %v3390_v41 = vld [vmem:[%s3795_s7] ss:$0 sm:$0xff] }
  0x12   :  { %v85_v1 = vld [vmem:[%s3818_s28] sm:$0xff]  ;;  %v86_v6 = vld [vmem:[%s3818_s28 + $0x8] sm:$0xff]  ;;  %197 = vmatpush.bf16.msra.mxu1 %v2975_v29 }
  0x13   :  { %v114_v2 = vld [vmem:[%s3819_s18 + $0x78] sm:$0xff]  ;;  %88 = vperm.xlu0 %3007, %v85_v1   ;;  %v113_v3 = vld [vmem:[%s3819_s18 + $0x70] sm:$0xff]  ;;  %v112_v4 = vld [vmem:[%s3819_s18 + $0x68] sm:$0xff] }
  0x14   :  { %115 = vmatpush.msra.mxu0 %v114_v2  ;;  %v111_v5 = vld [vmem:[%s3819_s18 + $0x60] sm:$0xff]  ;;  %v110_v7 = vld [vmem:[%s3819_s18 + $0x58] sm:$0xff]  ;;  %v109_v8 = vld [vmem:[%s3819_s18 + $0x50] sm:$0xff] }
  0x15   :  { %v108_v9 = vld [vmem:[%s3819_s18 + $0x48] sm:$0xff]  ;;  %v107_v10 = vld [vmem:[%s3819_s18 + $0x40] sm:$0xff]  ;;  %v106_v11 = vld [vmem:[%s3819_s18 + $0x38] sm:$0xff] }
  0x16   :  { %116 = vmatpush.msra.mxu0 %v113_v3  ;;  %v105_v12 = vld [vmem:[%s3819_s18 + $0x30] sm:$0xff]  ;;  %v104_v13 = vld [vmem:[%s3819_s18 + $0x28] sm:$0xff]  ;;  %v103_v14 = vld [vmem:[%s3819_s18 + $0x20] sm:$0xff] }
  0x17   :  { %v102_v15 = vld [vmem:[%s3819_s18 + $0x18] sm:$0xff]  ;;  %v101_v16 = vld [vmem:[%s3819_s18 + $0x10] sm:$0xff]  ;;  %v100_v17 = vld [vmem:[%s3819_s18 + $0x8] sm:$0xff] }
  0x18   :  { %117 = vmatpush.msra.mxu0 %v112_v4  ;;  %v99_v18 = vld [vmem:[%s3819_s18] sm:$0xff]  ;;  %v139_v21 = vld [vmem:[%s3820_s24 + $0x8] sm:$0xff]  ;;  %s2786_s18 = sshll.u32 %s3808_s20, 4  ;;  %s2787_s18 = int_to_ptr.hbm [resolvable:$true] %s2786_s18 }
  0x19   :  { %v138_v19 = vld [vmem:[%s3820_s24] sm:$0xff]  ;;  %vm141_vm1 = vcmp.gt.f32.partialorder %v139_v21, 0.5  ;;  %s3822_s24 = sld [smem:[#allocation10_spill]] }
  0x1a   :  { %118 = vmatpush.msra.mxu0 %v111_v5  ;;  %vm140_vm0 = vcmp.gt.f32.partialorder %v138_v19, 0.5  ;;  %v144_v22 = vsel %vm141_vm1, 1, %v3191_v0  ;;  %v3029_v32 = vld [vmem:[%s3821_s0] ss:$0 sm:$0xff] }
  0x1b   :  { %91 = vperm.xlu0 %3007, %v86_v6   ;;  %v143_v20 = vsel %vm140_vm0, 1, %v3191_v0 }
  0x1c   :  { %119 = vmatpush.msra.mxu0 %v110_v7  ;;  %146 = vperm.xlu1 %3008, %v143_v20  }
  0x1e   :  { %120 = vmatpush.msra.mxu0 %v109_v8 }
  0x1f   :  { %v161_v60 = vld [vmem:[%s3822_s24] sm:$0x1] }
  0x20   :  { %121 = vmatpush.msra.mxu0 %v108_v9  ;;  %v163_v61 = vmul.f32 -1e+09, %v161_v60 }
  0x22   :  { %122 = vmatpush.msra.mxu0 %v107_v10  ;;  %v3404_v62 = vperm.slane %v163_v61, 0 }
  0x24   :  { %123 = vmatpush.msra.mxu0 %v106_v11  ;;  %149 = vperm.xlu1 %3008, %v144_v22  }
  0x26   :  { %124 = vmatpush.msra.mxu0 %v105_v12 }
  0x28   :  { %125 = vmatpush.msra.mxu0 %v104_v13 }
  0x2a   :  { %126 = vmatpush.msra.mxu0 %v103_v14 }
  0x2c   :  { %127 = vmatpush.msra.mxu0 %v102_v15 }
  0x2e   :  { %128 = vmatpush.msra.mxu0 %v101_v16 }
  0x30   :  { %129 = vmatpush.msra.mxu0 %v100_v17 }
  0x32   :  { %130 = vmatpush.msra.mxu0 %v99_v18 }
  0x85   :  { %v89_v25 = vpop.permute.xlu0 %88 }
  0x86   :  { %vm93_vm2 = vcmp.eq.s32.totalorder %v84_v24, %v89_v25 }
  0x87   :  { %2801 = vmatmul.msk.f32.vlgmr.msra.gmra.mxu0 %vm93_vm2, %v3192_v26 }
  0x8d   :  { %v92_v27 = vpop.permute.xlu0 %91 }
  0x8e   :  { %vm94_vm3 = vcmp.eq.s32.totalorder %v84_v24, %v92_v27  ;;  %v147_v30 = vpop.permute.xlu1 %146 }
  0x8f   :  { %2802 = vmatmul.msk.f32.gmra.mxu0 %vm94_vm3, %v3192_v26  ;;  %vm151_vm4 = vcmp.eq.s32.totalorder %v147_v30, 1 }
  0x96   :  { %v150_v33 = vpop.permute.xlu1 %149 }
  0x97   :  { %vm152_vm5 = vcmp.eq.s32.totalorder %v150_v33, 1 }
 0x104   :  { %v132_v31 = vpop.f32.mrf.mxu0 }
 0x105   :  { %v156_v34 = vsel %vm151_vm4, %v3029_v32, %v132_v31 }
 0x106   :  { %v3380_v38 = vadd.f32 %v158_v35, %v156_v34 }
 0x10c   :  { %v135_v36 = vpop.f32.mrf.mxu0 }
 0x10d   :  { %v157_v37 = vsel %vm152_vm5, %v3029_v32, %v135_v36 }
 0x10e   :  { %v3382_v39 = vadd.f32 %v158_v35, %v157_v37 }
 0x110   :  { %v165_v40 = vpack.c.bf16 %v3382_v39, %v3380_v38 }
 0x112   :  { %2811 = vmatmul.msk.bf16.vlgmr.msra.gmra.mxu1 %vm186_vm6, %v165_v40 }
 0x18f   :  { %v199_v42 = vpop.f32.mrf.mxu1 }
 0x190   :  { %v200_v43 = vadd.f32 %v3390_v41, %v199_v42 }
 0x192   :  { %204 = vxpose.xlu2.b32.start.end [1/1] (short) (narrow) %v200_v43, 96 }
 0x197   :  { %v201_v25 = vpop.f32.mrf.mxu1 }
 0x198   :  { %v202_v26 = vadd.f32 %v3390_v41, %v201_v25 }
 0x22b   :  { %v220_v44 = vpop.trf.xlu2 }
 0x22c   :  { %236 = vxpose.xlu2.b32.start.end [1/1] (short) (narrow) %v220_v44, 8 }
 0x233   :  { %v221_v45 = vpop.trf.xlu2 }
 0x234   :  { %292 = vxpose.xlu0.b32.start.end [1/1] (short) (narrow) %v221_v45, 8 }
 0x23b   :  { %v222_v46 = vpop.trf.xlu2 }
 0x23c   :  { %347 = vxpose.xlu1.b32.start.end [1/1] (short) (narrow) %v222_v46, 8 }
 0x243   :  { %v223_v47 = vpop.trf.xlu2 }
 0x244   :  { %402 = vxpose.xlu0.b32.start.end [1/1] (short) (narrow) %v223_v47, 8 }
 0x24b   :  { %v224_v48 = vpop.trf.xlu2 }
 0x24c   :  { %287 = vmatpush.msra.mxu2 %v224_v48 }
 0x253   :  { %v225_v49 = vpop.trf.xlu2 }
 0x254   :  { %342 = vmatpush.msra.mxu3 %v225_v49 }
 0x25b   :  { %v226_v50 = vpop.trf.xlu2 }
 0x25c   :  { %397 = vmatpush.msrb.mxu2 %v226_v50 }
 0x263   :  { %v227_v51 = vpop.trf.xlu2 }
 0x264   :  { %452 = vmatpush.msrb.mxu3 %v227_v51 }
 0x26b   :  { %v228_v52 = vpop.trf.xlu2 }
 0x273   :  { %v3393_v53 = vpop.trf.xlu2 }
 0x27b   :  { %v230_v54 = vpop.trf.xlu2 }
 0x283   :  { %v3395_v55 = vpop.trf.xlu2 }
 0x2c5   :  { %v252_v56 = vpop.trf.xlu2 }
 0x2c6   :  { %2812 = vmatmul.msk.f32.vlgmr.msra.gmra.mxu2 %vm268_vm7, %v252_v56 }
 0x2d8   :  { %v308_v58 = vpop.trf.xlu0 }
 0x2d9   :  { %2813 = vmatmul.msk.f32.vlgmr.msra.gmra.mxu3 %vm268_vm7, %v308_v58 }
 0x2e0   :  { %v363_v57 = vpop.trf.xlu1 }
 0x2e1   :  { %2814 = vmatmul.msk.f32.vlgmr.msrb.gmra.mxu2 %vm268_vm7, %v363_v57 }
 0x2e8   :  { %v418_v59 = vpop.trf.xlu0 }
 0x2e9   :  { %2815 = vmatmul.msk.f32.vlgmr.msrb.gmra.mxu3 %vm268_vm7, %v418_v59 }
 0x349   :  { %v289_v63 = vpop.f32.mrf.mxu2 }
 0x34a   :  { %v457_v0 = vmul.f32 0.17677669, %v289_v63 }
 0x34c   :  { %v464_v1 = vadd.f32 %v3404_v62, %v457_v0 }
 0x34e   :  { %v468_v2 = vsel %vm268_vm7, %v464_v1, -inf }
 0x34f   :  { %469 = vmax.xlane.f32.xlu0 %v468_v2 }
 0x35c   :  { %v344_v7 = vpop.f32.mrf.mxu3 }
 0x35d   :  { %v458_v8 = vmul.f32 0.17677669, %v344_v7 }
 0x35f   :  { %v465_v9 = vadd.f32 %v3404_v62, %v458_v8 }
 0x361   :  { %v471_v10 = vsel %vm268_vm7, %v465_v9, -inf }
 0x362   :  { %472 = vmax.xlane.f32.xlu1 %v471_v10 }
 0x364   :  { %v399_v3 = vpop.f32.mrf.mxu2 }
 0x365   :  { %v459_v4 = vmul.f32 0.17677669, %v399_v3 }
 0x367   :  { %v466_v5 = vadd.f32 %v3404_v62, %v459_v4 }
 0x369   :  { %v474_v6 = vsel %vm268_vm7, %v466_v5, -inf }
 0x36a   :  { %475 = vmax.xlane.f32.xlu2 %v474_v6 }
 0x36c   :  { %v454_v11 = vpop.f32.mrf.mxu3 }
 0x36d   :  { %v460_v12 = vmul.f32 0.17677669, %v454_v11 }
 0x36f   :  { %v467_v13 = vadd.f32 %v3404_v62, %v460_v12 }
 0x371   :  { %v477_v14 = vsel %vm268_vm7, %v467_v13, -inf }
 0x372   :  { %478 = vmax.xlane.f32.xlu1 %v477_v14 }
 0x3c2   :  { %v470_v15 = vpop.xlane.xlu0 %469 }
 0x3c3   :  { %v480_v16 = vsub.f32 %v464_v1, %v470_v15 }
 0x3c5   :  { %v484_v17 = vmul.f32 1.442695, %v480_v16 }
 0x3c7   :  { %3054 = vpow2.f32 %v484_v17 }
 0x3cd   :  { %v3055_v18 = vpop.eup %3054 }
 0x3ce   :  { %v492_v19 = vsel %vm268_vm7, %v3055_v18, 0.0 }
 0x3cf   :  { %493 = vadd.xlane.f32.xlu0 %v492_v19 }
 0x3d5   :  { %v473_v36 = vpop.xlane.xlu1 %472 }
 0x3d6   :  { %v481_v37 = vsub.f32 %v465_v9, %v473_v36 }
 0x3d8   :  { %v486_v40 = vmul.f32 1.442695, %v481_v37 }
 0x3dd   :  { %v476_v20 = vpop.xlane.xlu2 %475 }
 0x3de   :  { %v482_v21 = vsub.f32 %v466_v5, %v476_v20 }
 0x3e0   :  { %v488_v22 = vmul.f32 1.442695, %v482_v21 }
 0x3e2   :  { %3056 = vpow2.f32 %v488_v22 }
 0x3e5   :  { %v479_v41 = vpop.xlane.xlu1 %478 }
 0x3e6   :  { %v483_v42 = vsub.f32 %v467_v13, %v479_v41 }
 0x3e8   :  { %v3057_v23 = vpop.eup %3056  ;;  %v490_v43 = vmul.f32 1.442695, %v483_v42 }
 0x3e9   :  { %v498_v24 = vsel %vm268_vm7, %v3057_v23, 0.0 }
 0x3ea   :  { %499 = vadd.xlane.f32.xlu0 %v498_v24 }
 0x413   :  { %616 = vxpose.xlu0.b32.start.end [1/1] (short) (narrow) %v202_v26, 96 }
 0x442   :  { %v494_v27 = vpop.xlane.xlu0 %493 }
 0x443   :  { %3058 = vrcp.f32 %v494_v27 }
 0x449   :  { %v3059_v28 = vpop.eup %3058 }
 0x44a   :  { %v508_v29 = vmul.f32 %v3059_v28, %v3055_v18 }
 0x44c   :  { %2816 = vmatpush.xpose.msk.msra.mxu2 %vm268_vm7, %v508_v29 }
 0x44f   :  { %2817 = vmatmul.msk.f32.vlgmr.msra.gmra.mxu2 %vm268_vm7, %v228_v52 }
 0x45d   :  { %v500_v30 = vpop.xlane.xlu0 %499 }
 0x45e   :  { %3060 = vrcp.f32 %v500_v30 }
 0x45f   :  { %3062 = vpow2.f32 %v486_v40 }
 0x460   :  { %3064 = vpow2.f32 %v490_v43 }
 0x464   :  { %v3061_v31 = vpop.eup %3060 }
 0x465   :  { %v510_v32 = vmul.f32 %v3061_v31, %v3057_v23  ;;  %v3063_v44 = vpop.eup %3062 }
 0x466   :  { %v495_v45 = vsel %vm268_vm7, %v3063_v44, 0.0  ;;  %v3065_v46 = vpop.eup %3064 }
 0x467   :  { %2820 = vmatpush.xpose.msk.msrb.mxu1 %vm268_vm7, %v510_v32  ;;  %v501_v47 = vsel %vm268_vm7, %v3065_v46, 0.0 }
 0x46a   :  { %2821 = vmatmul.msk.f32.vlgmr.msrb.gmra.mxu1 %vm268_vm7, %v230_v54 }
 0x4b7   :  { %v632_v33 = vpop.trf.xlu0 }
 0x4b8   :  { %648 = vxpose.xlu1.b32.start.end [1/1] (short) (narrow) %v632_v33, 8 }
 0x4bf   :  { %v633_v34 = vpop.trf.xlu0 }
 0x4c0   :  { %703 = vxpose.xlu2.b32.start.end [1/1] (short) (narrow) %v633_v34, 8 }
 0x4c7   :  { %v634_v35 = vpop.trf.xlu0 }
 0x4c8   :  { %758 = vxpose.xlu0.b32.start.end [1/1] (short) (narrow) %v634_v35, 8 }
 0x4cf   :  { %v635_v48 = vpop.trf.xlu0 }
 0x4d2   :  { %v3450_v12 = vpop.f32.mrf.mxu2 }
 0x4d7   :  { %v636_v49 = vpop.trf.xlu0 }
 0x4df   :  { %v637_v50 = vpop.trf.xlu0 }
 0x4e0   :  { %753 = vmatpush.msra.mxu1 %v637_v50 }
 0x4e7   :  { %v638_v52 = vpop.trf.xlu0  ;;  %v3440_v5 = vpop.f32.mrf.mxu1 }
 0x4ef   :  { %v639_v54 = vpop.trf.xlu0 }
 0x4f7   :  { %v3424_v56 = vpop.trf.xlu0 }
 0x4ff   :  { %v3426_v58 = vpop.trf.xlu0 }
 0x507   :  { %v3428_v60 = vpop.trf.xlu0 }
 0x50f   :  { %v3433_v3 = vpop.trf.xlu0 }
 0x518   :  { %496 = vadd.xlane.f32.xlu1 %v495_v45 }
 0x520   :  { %502 = vadd.xlane.f32.xlu1 %v501_v47 }
 0x559   :  { %v719_v51 = vpop.trf.xlu2 }
 0x55a   :  { %813 = vxpose.xlu1.b32.start.end [1/1] (short) (narrow) %v635_v48, 8  ;;  %2825 = vmatmul.msk.f32.vlgmr.msra.gmra.mxu1 %vm268_vm7, %v719_v51 }
 0x55c   :  { %v664_v57 = vpop.trf.xlu1 }
 0x56c   :  { %v774_v4 = vpop.trf.xlu0 }
 0x58b   :  { %v497_v59 = vpop.xlane.xlu1 %496 }
 0x58c   :  { %3066 = vrcp.f32 %v497_v59 }
 0x592   :  { %v3067_v61 = vpop.eup %3066 }
 0x593   :  { %v509_v63 = vmul.f32 %v3067_v61, %v3063_v44  ;;  %v503_v0 = vpop.xlane.xlu1 %502 }
 0x594   :  { %3068 = vrcp.f32 %v503_v0 }
 0x595   :  { %2818 = vmatpush.xpose.msk.msra.mxu3 %vm268_vm7, %v509_v63 }
 0x598   :  { %2819 = vmatmul.msk.f32.vlgmr.msra.gmra.mxu3 %vm268_vm7, %v3393_v53  ;;  %v162_v53 = vld [vmem:[%s3822_s24 + $0x1] sm:$0x1] }
 0x599   :  { %698 = vmatpush.msrb.mxu3 %v636_v49  ;;  %v164_v8 = vmul.f32 -1e+09, %v162_v53 }
 0x59a   :  { %v3069_v1 = vpop.eup %3068 }
 0x59b   :  { %863 = vmatpush.msra.mxu3 %v639_v54  ;;  %v511_v2 = vmul.f32 %v3069_v1, %v3065_v46  ;;  %v3445_v9 = vperm.slane %v164_v8, 0 }
 0x59d   :  { %2822 = vmatpush.xpose.msk.msrb.mxu2 %vm268_vm7, %v511_v2 }
 0x5a0   :  { %2823 = vmatmul.msk.f32.vlgmr.msrb.gmra.mxu2 %vm268_vm7, %v3395_v55  ;;  %2824 = vmatmul.msk.f32.vlgmr.msrb.gmra.mxu3 %vm268_vm7, %v664_v57 }
 0x5a1   :  { %808 = vmatpush.msra.mxu2 %v638_v52 }
 0x5a8   :  { %2826 = vmatmul.msk.f32.vlgmr.msra.gmra.mxu2 %vm268_vm7, %v774_v4 }
 0x5d7   :  { %v755_v6 = vpop.f32.mrf.mxu1 }
 0x5d8   :  { %v869_v7 = vmul.f32 0.17677669, %v755_v6 }
 0x5da   :  { %v876_v10 = vadd.f32 %v3445_v9, %v869_v7 }
 0x5dc   :  { %v882_v55 = vsel %vm268_vm7, %v876_v10, -inf }
 0x5dd   :  { %883 = vmax.xlane.f32.xlu1 %v882_v55 }
 0x5fe   :  { %v829_v11 = vpop.trf.xlu1 }
 0x5ff   :  { %2827 = vmatmul.msk.f32.vlgmr.msra.gmra.mxu3 %vm268_vm7, %v829_v11 }
 0x61b   :  { %v3452_v13 = vpop.f32.mrf.mxu3 }
 0x623   :  { %v3454_v14 = vpop.f32.mrf.mxu2  ;;  %v700_v15 = vpop.f32.mrf.mxu3 }
 0x624   :  { %v868_v16 = vmul.f32 0.17677669, %v700_v15 }
 0x626   :  { %v875_v17 = vadd.f32 %v3445_v9, %v868_v16  ;;  %v2977_v16 = vld [vmem:[%s3796_s8] sm:$0xff] }
 0x628   :  { %v879_v18 = vsel %vm268_vm7, %v875_v17, -inf }
 0x629   :  { %880 = vmax.xlane.f32.xlu2 %v879_v18 }
 0x62b   :  { %v810_v19 = vpop.f32.mrf.mxu2 }
 0x62c   :  { %v870_v20 = vmul.f32 0.17677669, %v810_v19 }
 0x62e   :  { %v877_v21 = vadd.f32 %v3445_v9, %v870_v20 }
 0x630   :  { %v885_v22 = vsel %vm268_vm7, %v877_v21, -inf }
 0x631   :  { %886 = vmax.xlane.f32.xlu0 %v885_v22  ;;  %v3031_v22 = vld [vmem:[%s3797_s9] ss:$0 sm:$0xff] }
 0x650   :  { %v884_v23 = vpop.xlane.xlu1 %883 }
 0x651   :  { %v892_v24 = vsub.f32 %v876_v10, %v884_v23 }
 0x653   :  { %v897_v25 = vmul.f32 1.442695, %v892_v24 }
 0x655   :  { %3070 = vpow2.f32 %v897_v25 }
 0x65b   :  { %v3071_v30 = vpop.eup %3070 }
 0x65c   :  { %v906_v31 = vsel %vm268_vm7, %v3071_v30, 0.0 }
 0x682   :  { %v865_v26 = vpop.f32.mrf.mxu3 }
 0x683   :  { %v871_v27 = vmul.f32 0.17677669, %v865_v26 }
 0x685   :  { %v878_v28 = vadd.f32 %v3445_v9, %v871_v27 }
 0x687   :  { %v888_v29 = vsel %vm268_vm7, %v878_v28, -inf }
 0x688   :  { %889 = vmax.xlane.f32.xlu1 %v888_v29  ;;  %v3193_v29 = vmov 32.0  }
 0x690   :  { %907 = vadd.xlane.f32.xlu1 %v906_v31 }
 0x69c   :  { %v881_v32 = vpop.xlane.xlu2 %880 }
 0x69d   :  { %v891_v33 = vsub.f32 %v875_v17, %v881_v32 }
 0x69f   :  { %v895_v34 = vmul.f32 1.442695, %v891_v33 }
 0x6a1   :  { %3072 = vpow2.f32 %v895_v34 }
 0x6a4   :  { %v887_v35 = vpop.xlane.xlu0 %886 }
 0x6a5   :  { %v893_v36 = vsub.f32 %v877_v21, %v887_v35 }
 0x6a7   :  { %v3073_v37 = vpop.eup %3072  ;;  %v899_v40 = vmul.f32 1.442695, %v893_v36 }
 0x6a8   :  { %v903_v41 = vsel %vm268_vm7, %v3073_v37, 0.0 }
 0x6a9   :  { %3074 = vpow2.f32 %v899_v40  ;;  %904 = vadd.xlane.f32.xlu1 %v903_v41 }
 0x6af   :  { %v3075_v42 = vpop.eup %3074 }
 0x6b0   :  { %v909_v43 = vsel %vm268_vm7, %v3075_v42, 0.0 }
 0x6b1   :  { %910 = vadd.xlane.f32.xlu2 %v909_v43 }
 0x6fb   :  { %v890_v44 = vpop.xlane.xlu1 %889 }
 0x6fc   :  { %v894_v45 = vsub.f32 %v878_v28, %v890_v44 }
 0x6fe   :  { %v901_v46 = vmul.f32 1.442695, %v894_v45 }
 0x700   :  { %3076 = vpow2.f32 %v901_v46  ;;  %v2980_v46 = vld [vmem:[%s3800_s12 + $0x8] sm:$0xff] }
 0x703   :  { %v908_v47 = vpop.xlane.xlu1 %907 }
 0x704   :  { %3078 = vrcp.f32 %v908_v47 }
 0x706   :  { %v3077_v48 = vpop.eup %3076 }
 0x707   :  { %v912_v49 = vsel %vm268_vm7, %v3077_v48, 0.0 }
 0x708   :  { %913 = vadd.xlane.f32.xlu1 %v912_v49  ;;  %v2979_v49 = vld [vmem:[%s3800_s12] sm:$0xff] }
 0x70a   :  { %v3079_v50 = vpop.eup %3078 }
 0x70b   :  { %v920_v51 = vmul.f32 %v3079_v50, %v3071_v30 }
 0x70d   :  { %2830 = vmatpush.xpose.msk.msrb.mxu2 %vm268_vm7, %v920_v51 }
 0x710   :  { %2831 = vmatmul.msk.f32.vlgmr.msrb.gmra.mxu2 %vm268_vm7, %v3426_v58 }
 0x711   :  { %1197 = vmatpush.bf16.msra.mxu2 %v2980_v46 }
 0x715   :  { %1198 = vmatpush.bf16.msra.mxu2 %v2979_v49 }
 0x71c   :  { %v905_v52 = vpop.xlane.xlu1 %904 }
 0x71d   :  { %3080 = vrcp.f32 %v905_v52 }
 0x723   :  { %v3081_v54 = vpop.eup %3080 }
 0x724   :  { %v919_v57 = vmul.f32 %v3081_v54, %v3073_v37  ;;  %v911_v59 = vpop.xlane.xlu2 %910 }
 0x725   :  { %3082 = vrcp.f32 %v911_v59 }
 0x726   :  { %2828 = vmatpush.xpose.msk.msrb.mxu1 %vm268_vm7, %v919_v57 }
 0x729   :  { %2829 = vmatmul.msk.f32.vlgmr.msrb.gmra.mxu1 %vm268_vm7, %v3424_v56 }
 0x72b   :  { %v3083_v61 = vpop.eup %3082 }
 0x72c   :  { %v921_v63 = vmul.f32 %v3083_v61, %v3075_v42 }
 0x72e   :  { %2832 = vmatpush.xpose.msk.msrb.mxu3 %vm268_vm7, %v921_v63 }
 0x731   :  { %2833 = vmatmul.msk.f32.vlgmr.msrb.gmra.mxu3 %vm268_vm7, %v3428_v60 }
 0x77b   :  { %v914_v0 = vpop.xlane.xlu1 %913 }
 0x77c   :  { %3084 = vrcp.f32 %v914_v0 }
 0x77d   :  { %3086 = vrcp.f32 %v3193_v29 }
 0x782   :  { %v3085_v58 = vpop.eup %3084 }
 0x783   :  { %v922_v1 = vmul.f32 %v3085_v58, %v3077_v48  ;;  %v3087_v30 = vpop.eup %3086 }
 0x784   :  { %v1111_v31 = vmul.f32 32.0, %v3087_v30  ;;  %vm1115_vm8 = vweird.f32 %v3087_v30 }
 0x785   :  { %2834 = vmatpush.xpose.msk.msrb.mxu0 %vm268_vm7, %v922_v1 }
 0x786   :  { %v1112_v32 = vsub.f32 1.0, %v1111_v31 }
 0x788   :  { %2835 = vmatmul.msk.f32.vlgmr.msrb.gmra.mxu0 %vm268_vm7, %v3433_v3  ;;  %v2978_v3 = vld [vmem:[%s3796_s8 + $0x8] sm:$0xff]  ;;  %v1113_v33 = vmul.f32 %v3087_v30, %v1112_v32 }
 0x789   :  { %1094 = vmatpush.bf16.msra.mxu1 %v2978_v3 }
 0x78a   :  { %v1114_v34 = vadd.f32 %v3087_v30, %v1113_v33 }
 0x78c   :  { %v3502_v35 = vsel %vm1115_vm8, %v3087_v30, %v1114_v34 }
 0x78d   :  { %1095 = vmatpush.bf16.msra.mxu1 %v2977_v16 }
 0x793   :  { %v972_v2 = vpop.f32.mrf.mxu2 }
 0x7a6   :  { %v946_v4 = vpop.f32.mrf.mxu1 }
 0x7a7   :  { %v3009_v6 = vpack.i.bf16 %v972_v2, %v946_v4 }
 0x7a9   :  { %3010 = vrot.lane.b32.xlu2 %v3009_v6, %s3190_s3 }
 0x7b4   :  { %v998_v8 = vpop.f32.mrf.mxu3 }
 0x803   :  { %v3011_v56 = vpop.permute.xlu2 %3010 }
 0x804   :  { %v3013_v53 = vunpack.i.h.bf16 %v3011_v56  ;;  %v3012_v7 = vunpack.i.l.bf16 %v3011_v56 }
 0x805   :  { %v1024_v10 = vpop.f32.mrf.mxu0 }
 0x806   :  { %v3014_v60 = vpack.i.bf16 %v1024_v10, %v998_v8  ;;  %v1043_v55 = vsel %vm268_vm7, %v3450_v12, %v3012_v7  ;;  %v1044_v11 = vsel %vm268_vm7, %v3452_v13, %v3013_v53  ;;  %v3032_v7 = vld [vmem:[%s3798_s10] ss:$0 sm:$0xff] }
 0x807   :  { %v1047_v15 = vpack.c.bf16 %v1044_v11, %v1043_v55  ;;  %v3033_v55 = vld [vmem:[%s3799_s11] ss:$0 sm:$0xff] }
 0x808   :  { %3015 = vrot.lane.b32.xlu1 %v3014_v60, %s3190_s3 }
 0x809   :  { %1057 = vxpose.xlu2.c.b16.start [1/2] (short) (narrow) %v1047_v15, 16 }
 0x87a   :  { %v3016_v17 = vpop.permute.xlu1 %3015 }
 0x87b   :  { %v3018_v18 = vunpack.i.h.bf16 %v3016_v17  ;;  %v3017_v12 = vunpack.i.l.bf16 %v3016_v17 }
 0x87d   :  { %v1046_v13 = vsel %vm268_vm7, %v3454_v14, %v3018_v18  ;;  %v1045_v19 = vsel %vm268_vm7, %v3440_v5, %v3017_v12  ;;  %v2984_v12 = vld [vmem:[%s3802_s14 + $0x18] sm:$0xff] }
 0x87e   :  { %v1048_v20 = vpack.c.bf16 %v1046_v13, %v1045_v19  ;;  %1252 = vmatpush.bf16.msra.mxu3 %v2984_v12  ;;  %v2983_v13 = vld [vmem:[%s3802_s14 + $0x10] sm:$0xff]  ;;  %v2982_v19 = vld [vmem:[%s3802_s14 + $0x8] sm:$0xff] }
 0x880   :  { %1058 = vxpose.xlu2.c.b16.end [2/2] (short) (narrow) %v1048_v20, 16  ;;  %v2981_v20 = vld [vmem:[%s3802_s14] sm:$0xff] }
 0x882   :  { %1253 = vmatpush.bf16.msra.mxu3 %v2983_v13  ;;  %v3038_v13 = vld [vmem:[%s3795_s7 + $0x1] ss:$0 sm:$0xff] }
 0x886   :  { %1254 = vmatpush.bf16.msra.mxu3 %v2982_v19 }
 0x88a   :  { %1255 = vmatpush.bf16.msra.mxu3 %v2981_v20 }
 0x911   :  { %v1065_v21 = vpop.trf.xlu2 }
 0x912   :  { %2844 = vmatmul.msk.bf16.vlgmr.msra.gmra.mxu1 %vm186_vm6, %v1065_v21 }
 0x98f   :  { %v1097_v23 = vpop.f32.mrf.mxu1 }
 0x990   :  { %v1098_v24 = vadd.f32 %v3031_v22, %v1097_v23 }
 0x992   :  { %v1102_v25 = vadd.f32 %v1098_v24, %v3380_v38 }
 0x994   :  { %v1104_v26 = vsel %vm186_vm6, %v1102_v25, 0.0 }
 0x995   :  { %1105 = vadd.xlane.f32.xlu1 %v1104_v26 }
 0x997   :  { %v1099_v14 = vpop.f32.mrf.mxu1 }
 0x998   :  { %v1100_v27 = vadd.f32 %v3031_v22, %v1099_v14  ;;  %v3034_v22 = vld [vmem:[%s3801_s13] ss:$0 sm:$0xff] }
 0x99a   :  { %v1103_v5 = vadd.f32 %v1100_v27, %v3382_v39 }
 0x99c   :  { %v1107_v28 = vsel %vm186_vm6, %v1103_v5, 0.0 }
 0x99d   :  { %1108 = vadd.xlane.f32.xlu0 %v1107_v28 }
 0xa08   :  { %v1106_v38 = vpop.xlane.xlu1 %1105 }
 0xa09   :  { %v1117_v36 = vmul.f32 %v3502_v35, %v1106_v38 }
 0xa0b   :  { %v1119_v37 = vsub.f32 %v1102_v25, %v1117_v36 }
 0xa0d   :  { %v1121_v40 = vmul.f32 %v1119_v37, %v1119_v37 }
 0xa0f   :  { %v1123_v39 = vsel %vm186_vm6, %v1121_v40, 0.0 }
 0xa10   :  { %v1109_v41 = vpop.xlane.xlu0 %1108  ;;  %1124 = vadd.xlane.f32.xlu0 %v1123_v39 }
 0xa11   :  { %v1118_v42 = vmul.f32 %v3502_v35, %v1109_v41 }
 0xa13   :  { %v1120_v43 = vsub.f32 %v1103_v5, %v1118_v42  ;;  %v3035_v5 = vld [vmem:[%s3803_s15] ss:$0 sm:$0xff] }
 0xa15   :  { %v1122_v44 = vmul.f32 %v1120_v43, %v1120_v43 }
 0xa17   :  { %v1126_v45 = vsel %vm186_vm6, %v1122_v44, 0.0 }
 0xa18   :  { %1127 = vadd.xlane.f32.xlu1 %v1126_v45 }
 0xa83   :  { %v1125_v47 = vpop.xlane.xlu0 %1124 }
 0xa84   :  { %v1129_v48 = vmul.f32 %v1125_v47, %v3502_v35  ;;  %v2986_v47 = vld [vmem:[%s3794_s6 + $0x18] sm:$0xff] }
 0xa85   :  { %1352 = vmatpush.bf16.msra.mxu0 %v2986_v47 }
 0xa86   :  { %v1131_v50 = vadd.f32 1e-05, %v1129_v48 }
 0xa88   :  { %3088 = vrsqrt.f32 %v1131_v50  ;;  %vm1139_vm10 = vweird.f32 %v1131_v50 }
 0xa8b   :  { %v1128_v51 = vpop.xlane.xlu1 %1127 }
 0xa8c   :  { %v1130_v52 = vmul.f32 %v1128_v51, %v3502_v35 }
 0xa8e   :  { %v3089_v54 = vpop.eup %3088  ;;  %v1132_v57 = vadd.f32 1e-05, %v1130_v52 }
 0xa8f   :  { %v1134_v59 = vmul.f32 %v3089_v54, %v1131_v50  ;;  %vm1140_vm9 = vweird.f32 %v3089_v54  ;;  %v2985_v50 = vld [vmem:[%s3794_s6 + $0x10] sm:$0xff]  ;;  %s3196_s6 = smov [#allocation5]  }
 0xa90   :  { %3090 = vrsqrt.f32 %v1132_v57  ;;  %vm1141_vm11 = vmor %vm1139_vm10, %vm1140_vm9  ;;  %vm1149_vm13 = vweird.f32 %v1132_v57  ;;  %1353 = vmatpush.bf16.msra.mxu0 %v2985_v50  ;;  %s2784_s2 = sshll.u32 %s3196_s6, 4  ;;  %s2785_s2 = int_to_ptr.vmem [resolvable:$true] %s2784_s2 }
 0xa91   :  { %v1135_v61 = vmul.f32 %v3089_v54, %v1134_v59 }
 0xa93   :  { %v1136_v63 = vmul.f32 0.5, %v1135_v61 }
 0xa95   :  { %v1137_v0 = vsub.f32 1.5, %v1136_v63 }
 0xa96   :  { %v3091_v58 = vpop.eup %3090 }
 0xa97   :  { %v1138_v1 = vmul.f32 %v3089_v54, %v1137_v0  ;;  %v1144_v2 = vmul.f32 %v3091_v58, %v1132_v57  ;;  %vm1150_vm12 = vweird.f32 %v3091_v58 }
 0xa98   :  { %vm1151_vm14 = vmor %vm1149_vm13, %vm1150_vm12 }
 0xa99   :  { %v1145_v4 = vmul.f32 %v3091_v58, %v1144_v2  ;;  %v1142_v6 = vsel %vm1141_vm11, %v3089_v54, %v1138_v1 }
 0xa9a   :  { %v1153_v8 = vmul.f32 %v1142_v6, %v1119_v37 }
 0xa9b   :  { %v1146_v56 = vmul.f32 0.5, %v1145_v4 }
 0xa9c   :  { %v1159_v11 = vmul.f32 %v3032_v7, %v1153_v8  ;;  %v3036_v8 = vld [vmem:[%s3804_s16] ss:$0 sm:$0xff] }
 0xa9d   :  { %v1147_v53 = vsub.f32 1.5, %v1146_v56 }
 0xa9e   :  { %v1165_v16 = vadd.f32 %v3033_v55, %v1159_v11  ;;  %v3037_v11 = vld [vmem:[%s3805_s17] ss:$0 sm:$0xff] }
 0xa9f   :  { %v1148_v10 = vmul.f32 %v3091_v58, %v1147_v53 }
 0xaa1   :  { %v1152_v60 = vsel %vm1151_vm14, %v3091_v58, %v1148_v10 }
 0xaa2   :  { %v1154_v15 = vmul.f32 %v1152_v60, %v1120_v43 }
 0xaa4   :  { %v1160_v3 = vmul.f32 %v3032_v7, %v1154_v15 }
 0xaa6   :  { %v1166_v17 = vadd.f32 %v3033_v55, %v1160_v3 }
 0xaa8   :  { %v1167_v18 = vpack.c.bf16 %v1166_v17, %v1165_v16 }
 0xaaa   :  { %2853 = vmatmul.msk.bf16.vlgmr.msra.gmra.mxu2 %vm186_vm6, %v1167_v18 }
 0xb2d   :  { %v1200_v21 = vpop.f32.mrf.mxu2 }
 0xb2e   :  { %v1201_v23 = vadd.f32 %v3034_v22, %v1200_v21 }
 0xb30   :  { %v1205_v26 = vmax.f32 %v1201_v23, 0.0 }
 0xb35   :  { %v1202_v24 = vpop.f32.mrf.mxu2 }
 0xb36   :  { %v1203_v25 = vadd.f32 %v3034_v22, %v1202_v24 }
 0xb38   :  { %v1206_v14 = vmax.f32 %v1203_v25, 0.0 }
 0xb3a   :  { %v1207_v27 = vpack.c.bf16 %v1206_v14, %v1205_v26 }
 0xb3c   :  { %2870 = vmatmul.msk.bf16.vlgmr.msra.gmra.mxu3 %vm1244_vm15, %v1207_v27 }
 0xbbf   :  { %v1257_v28 = vpop.f32.mrf.mxu3 }
 0xbc0   :  { %v1258_v29 = vadd.f32 %v3035_v5, %v1257_v28 }
 0xbc2   :  { %v1262_v30 = vadd.f32 %v1258_v29, %v1165_v16 }
 0xbc4   :  { %v1264_v31 = vsel %vm186_vm6, %v1262_v30, 0.0 }
 0xbc5   :  { %1265 = vadd.xlane.f32.xlu0 %v1264_v31 }
 0xbc7   :  { %v1259_v32 = vpop.f32.mrf.mxu3 }
 0xbc8   :  { %v1260_v33 = vadd.f32 %v3035_v5, %v1259_v32 }
 0xbca   :  { %v1263_v34 = vadd.f32 %v1260_v33, %v1166_v17 }
 0xbcc   :  { %v1267_v38 = vsel %vm186_vm6, %v1263_v34, 0.0 }
 0xbcd   :  { %1268 = vadd.xlane.f32.xlu2 %v1267_v38 }
 0xc38   :  { %v1266_v36 = vpop.xlane.xlu0 %1265 }
 0xc39   :  { %v1270_v37 = vmul.f32 %v1266_v36, %v3502_v35 }
 0xc3b   :  { %v1272_v40 = vsub.f32 %v1262_v30, %v1270_v37 }
 0xc3d   :  { %v1274_v39 = vmul.f32 %v1272_v40, %v1272_v40 }
 0xc3f   :  { %v1276_v41 = vsel %vm186_vm6, %v1274_v39, 0.0 }
 0xc40   :  { %v1269_v42 = vpop.xlane.xlu2 %1268  ;;  %1277 = vadd.xlane.f32.xlu1 %v1276_v41 }
 0xc41   :  { %v1271_v43 = vmul.f32 %v1269_v42, %v3502_v35 }
 0xc43   :  { %v1273_v44 = vsub.f32 %v1263_v34, %v1271_v43 }
 0xc45   :  { %v1275_v45 = vmul.f32 %v1273_v44, %v1273_v44 }
 0xc47   :  { %v1279_v46 = vsel %vm186_vm6, %v1275_v45, 0.0 }
 0xc48   :  { %1280 = vadd.xlane.f32.xlu0 %v1279_v46 }
 0xcb3   :  { %v1278_v48 = vpop.xlane.xlu1 %1277 }
 0xcb4   :  { %v1282_v49 = vmul.f32 %v1278_v48, %v3502_v35 }
 0xcb6   :  { %v1284_v51 = vadd.f32 1e-05, %v1282_v49 }
 0xcb8   :  { %3092 = vrsqrt.f32 %v1284_v51  ;;  %vm1292_vm1 = vweird.f32 %v1284_v51 }
 0xcbb   :  { %v1281_v52 = vpop.xlane.xlu0 %1280 }
 0xcbc   :  { %v1283_v54 = vmul.f32 %v1281_v52, %v3502_v35 }
 0xcbe   :  { %v3093_v57 = vpop.eup %3092  ;;  %v1285_v59 = vadd.f32 1e-05, %v1283_v54 }
 0xcbf   :  { %v1287_v61 = vmul.f32 %v3093_v57, %v1284_v51  ;;  %vm1293_vm0 = vweird.f32 %v3093_v57 }
 0xcc0   :  { %3094 = vrsqrt.f32 %v1285_v59  ;;  %vm1294_vm2 = vmor %vm1292_vm1, %vm1293_vm0  ;;  %vm1302_vm4 = vweird.f32 %v1285_v59 }
 0xcc1   :  { %v1288_v63 = vmul.f32 %v3093_v57, %v1287_v61 }
 0xcc3   :  { %v1289_v0 = vmul.f32 0.5, %v1288_v63 }
 0xcc5   :  { %v1290_v58 = vsub.f32 1.5, %v1289_v0 }
 0xcc6   :  { %v3095_v1 = vpop.eup %3094 }
 0xcc7   :  { %v1291_v2 = vmul.f32 %v3093_v57, %v1290_v58  ;;  %v1297_v4 = vmul.f32 %v3095_v1, %v1285_v59  ;;  %vm1303_vm3 = vweird.f32 %v3095_v1 }
 0xcc8   :  { %vm1304_vm5 = vmor %vm1302_vm4, %vm1303_vm3  ;;  %vm2472_vm3 = vcmask 1047556  }
 0xcc9   :  { %v1298_v6 = vmul.f32 %v3095_v1, %v1297_v4  ;;  %v1295_v56 = vsel %vm1294_vm2, %v3093_v57, %v1291_v2 }
 0xcca   :  { %v1306_v10 = vmul.f32 %v1295_v56, %v1272_v40 }
 0xccb   :  { %v1299_v53 = vmul.f32 0.5, %v1298_v6 }
 0xccc   :  { %v1312_v15 = vmul.f32 %v3036_v8, %v1306_v10 }
 0xccd   :  { %v1300_v7 = vsub.f32 1.5, %v1299_v53 }
 0xcce   :  { %v3562_v17 = vadd.f32 %v3037_v11, %v1312_v15 }
 0xccf   :  { %v1301_v60 = vmul.f32 %v3095_v1, %v1300_v7 }
 0xcd1   :  { %v1305_v55 = vsel %vm1304_vm5, %v3095_v1, %v1301_v60 }
 0xcd2   :  { %v1307_v3 = vmul.f32 %v1305_v55, %v1273_v44 }
 0xcd4   :  { %v1313_v16 = vmul.f32 %v3036_v8, %v1307_v3 }
 0xcd6   :  { %v3564_v18 = vadd.f32 %v3037_v11, %v1313_v16 }
 0xcd8   :  { %v1320_v12 = vpack.c.bf16 %v3564_v18, %v3562_v17 }
 0xcda   :  { %2884 = vmatmul.msk.bf16.vlgmr.msra.gmra.mxu0 %vm186_vm6, %v1320_v12 }
 0xd57   :  { %v1355_v19 = vpop.f32.mrf.mxu0 }
 0xd58   :  { %v1356_v20 = vadd.f32 %v3038_v13, %v1355_v19 }
 0xd5a   :  { %1360 = vxpose.xlu1.b32.start.end [1/1] (short) (narrow) %v1356_v20, 96 }
 0xd5f   :  { %v1357_v25 = vpop.f32.mrf.mxu0 }
 0xd60   :  { %v1358_v26 = vadd.f32 %v3038_v13, %v1357_v25 }
 0xdfe   :  { %v1376_v21 = vpop.trf.xlu1 }
 0xe06   :  { %v1377_v22 = vpop.trf.xlu1 }
 0xe07   :  { %1447 = vxpose.xlu0.b32.start.end [1/1] (short) (narrow) %v1377_v22, 8 }
 0xe0e   :  { %v1378_v23 = vpop.trf.xlu1 }
 0xe0f   :  { %1392 = vxpose.xlu0.b32.start.end [1/1] (short) (narrow) %v1376_v21, 8 }
 0xe16   :  { %v1379_v24 = vpop.trf.xlu1 }
 0xe17   :  { %1502 = vxpose.xlu0.b32.start.end [1/1] (short) (narrow) %v1378_v23, 8  ;;  %1557 = vxpose.xlu1.b32.start.end [1/1] (short) (narrow) %v1379_v24, 8 }
 0xe1e   :  { %v1380_v14 = vpop.trf.xlu1 }
 0xe1f   :  { %1768 = vxpose.xlu1.b32.start.end [1/1] (short) (narrow) %v1358_v26, 96  ;;  %1442 = vmatpush.msrb.mxu1 %v1380_v14 }
 0xe26   :  { %v1381_v27 = vpop.trf.xlu1 }
 0xe27   :  { %1497 = vmatpush.msrb.mxu2 %v1381_v27 }
 0xe2e   :  { %v1382_v5 = vpop.trf.xlu1 }
 0xe2f   :  { %1552 = vmatpush.msrb.mxu0 %v1382_v5 }
 0xe36   :  { %v1383_v28 = vpop.trf.xlu1 }
 0xe37   :  { %1607 = vmatpush.msra.mxu1 %v1383_v28 }
 0xe3e   :  { %v3572_v29 = vpop.trf.xlu1 }
 0xe46   :  { %v3574_v30 = vpop.trf.xlu1 }
 0xe4e   :  { %v3576_v31 = vpop.trf.xlu1 }
 0xe56   :  { %v3579_v33 = vpop.trf.xlu1 }
 0xeab   :  { %v1463_v32 = vpop.trf.xlu0 }
 0xeac   :  { %2886 = vmatmul.msk.f32.vlgmr.msrb.gmra.mxu2 %vm268_vm7, %v1463_v32 }
 0xeb3   :  { %v1408_v34 = vpop.trf.xlu0 }
 0xeb4   :  { %2885 = vmatmul.msk.f32.vlgmr.msrb.gmra.mxu1 %vm268_vm7, %v1408_v34 }
 0xebb   :  { %v1518_v38 = vpop.trf.xlu0  ;;  %v1573_v36 = vpop.trf.xlu1 }
 0xebc   :  { %2887 = vmatmul.msk.f32.vlgmr.msrb.gmra.mxu0 %vm268_vm7, %v1518_v38  ;;  %2888 = vmatmul.msk.f32.vlgmr.msra.gmra.mxu1 %vm268_vm7, %v1573_v36 }
 0xec3   :  { %v1784_v37 = vpop.trf.xlu1 }
 0xecb   :  { %v1785_v39 = vpop.trf.xlu1 }
 0xecc   :  { %1855 = vxpose.xlu1.b32.start.end [1/1] (short) (narrow) %v1785_v39, 8 }
 0xed3   :  { %v1786_v61 = vpop.trf.xlu1 }
 0xedb   :  { %v1787_v13 = vpop.trf.xlu1 }
 0xee3   :  { %v1788_v19 = vpop.trf.xlu1 }
 0xeeb   :  { %v1789_v20 = vpop.trf.xlu1 }
 0xef3   :  { %v1790_v21 = vpop.trf.xlu1 }
 0xefb   :  { %v1791_v22 = vpop.trf.xlu1 }
 0xf03   :  { %v3596_v23 = vpop.trf.xlu1 }
 0xf0b   :  { %v3598_v24 = vpop.trf.xlu1 }
 0xf13   :  { %v3600_v26 = vpop.trf.xlu1 }
 0xf1b   :  { %v3605_v38 = vpop.trf.xlu1 }
 0xf2f   :  { %v1499_v40 = vpop.f32.mrf.mxu2 }
 0xf30   :  { %v1613_v41 = vmul.f32 0.17677669, %v1499_v40 }
 0xf31   :  { %v1444_v42 = vpop.f32.mrf.mxu1 }
 0xf32   :  { %v1612_v43 = vmul.f32 0.17677669, %v1444_v42  ;;  %v1617_v44 = vadd.f32 %v1613_v41, %v3404_v62 }
 0xf34   :  { %v1623_v45 = vsel %vm268_vm7, %v1617_v44, -inf  ;;  %v1616_v46 = vadd.f32 %v1612_v43, %v3404_v62 }
 0xf35   :  { %1624 = vmax.xlane.f32.xlu2 %v1623_v45 }
 0xf36   :  { %v1620_v47 = vsel %vm268_vm7, %v1616_v46, -inf }
 0xf37   :  { %1621 = vmax.xlane.f32.xlu0 %v1620_v47 }
 0xf39   :  { %v1554_v48 = vpop.f32.mrf.mxu0  ;;  %v1609_v49 = vpop.f32.mrf.mxu1 }
 0xf3a   :  { %v1614_v50 = vmul.f32 0.17677669, %v1554_v48  ;;  %v1615_v52 = vmul.f32 0.17677669, %v1609_v49 }
 0xf3c   :  { %v1618_v51 = vadd.f32 %v1614_v50, %v3404_v62  ;;  %v1619_v57 = vadd.f32 %v1615_v52, %v3404_v62 }
 0xf3e   :  { %v1626_v54 = vsel %vm268_vm7, %v1618_v51, -inf  ;;  %v1629_v59 = vsel %vm268_vm7, %v1619_v57, -inf }
 0xf3f   :  { %1627 = vmax.xlane.f32.xlu2 %v1626_v54 }
 0xf47   :  { %1630 = vmax.xlane.f32.xlu2 %v1629_v59 }
 0xf60   :  { %1910 = vxpose.xlu0.b32.start.end [1/1] (short) (narrow) %v1786_v61, 8 }
 0xf70   :  { %v1871_v39 = vpop.trf.xlu1 }
 0xfa8   :  { %v1625_v63 = vpop.xlane.xlu2 %1624 }
 0xfa9   :  { %v1633_v1 = vsub.f32 %v1617_v44, %v1625_v63 }
 0xfaa   :  { %v1622_v0 = vpop.xlane.xlu0 %1621 }
 0xfab   :  { %v1632_v58 = vsub.f32 %v1616_v46, %v1622_v0  ;;  %v1638_v4 = vmul.f32 1.442695, %v1633_v1 }
 0xfad   :  { %v1636_v2 = vmul.f32 1.442695, %v1632_v58 }
 0xfaf   :  { %3096 = vpow2.f32 %v1636_v2 }
 0xfb0   :  { %3098 = vpow2.f32 %v1638_v4 }
 0xfb2   :  { %v1628_v6 = vpop.xlane.xlu2 %1627 }
 0xfb3   :  { %v1634_v53 = vsub.f32 %v1618_v51, %v1628_v6 }
 0xfb5   :  { %v3097_v56 = vpop.eup %3096  ;;  %v1640_v62 = vmul.f32 1.442695, %v1634_v53 }
 0xfb6   :  { %v1644_v7 = vsel %vm268_vm7, %v3097_v56, 0.0  ;;  %v3099_v10 = vpop.eup %3098 }
 0xfb7   :  { %1645 = vadd.xlane.f32.xlu2 %v1644_v7  ;;  %3100 = vpow2.f32 %v1640_v62  ;;  %v1647_v55 = vsel %vm268_vm7, %v3099_v10, 0.0 }
 0xfba   :  { %v1631_v8 = vpop.xlane.xlu2 %1630 }
 0xfbb   :  { %v1635_v60 = vsub.f32 %v1619_v57, %v1631_v8 }
 0xfbd   :  { %v1642_v11 = vmul.f32 1.442695, %v1635_v60  ;;  %v3101_v15 = vpop.eup %3100 }
 0xfbe   :  { %v1650_v3 = vsel %vm268_vm7, %v3101_v15, 0.0 }
 0xfbf   :  { %1648 = vadd.xlane.f32.xlu2 %v1647_v55  ;;  %3102 = vpow2.f32 %v1642_v11 }
 0xfc5   :  { %v3103_v16 = vpop.eup %3102 }
 0xfc6   :  { %v1653_v12 = vsel %vm268_vm7, %v3103_v16, 0.0 }
 0xfc7   :  { %1651 = vadd.xlane.f32.xlu2 %v1650_v3 }
 0xfcf   :  { %1654 = vadd.xlane.f32.xlu2 %v1653_v12 }
 0xff8   :  { %1800 = vxpose.xlu2.b32.start.end [1/1] (short) (narrow) %v1784_v37, 8 }
0x1000   :  { %1965 = vxpose.xlu2.b32.start.end [1/1] (short) (narrow) %v1787_v13, 8 }
0x1004   :  { %v1926_v42 = vpop.trf.xlu0 }
0x102a   :  { %v1646_v25 = vpop.xlane.xlu2 %1645 }
0x102b   :  { %3104 = vrcp.f32 %v1646_v25 }
0x1031   :  { %v3105_v14 = vpop.eup %3104 }
0x1032   :  { %v1660_v27 = vmul.f32 %v3105_v14, %v3097_v56  ;;  %v1649_v5 = vpop.xlane.xlu2 %1648 }
0x1033   :  { %3106 = vrcp.f32 %v1649_v5 }
0x1034   :  { %2889 = vmatpush.xpose.msk.msra.mxu2 %vm268_vm7, %v1660_v27 }
0x1037   :  { %2890 = vmatmul.msk.f32.vlgmr.msra.gmra.mxu2 %vm268_vm7, %v3572_v29 }
0x1038   :  { %1850 = vmatpush.msrb.mxu2 %v1788_v19 }
0x1039   :  { %v3107_v28 = vpop.eup %3106 }
0x103a   :  { %v1661_v32 = vmul.f32 %v3107_v28, %v3099_v10  ;;  %v1652_v34 = vpop.xlane.xlu2 %1651 }
0x103b   :  { %3108 = vrcp.f32 %v1652_v34 }
0x103c   :  { %2891 = vmatpush.xpose.msk.msrb.mxu3 %vm268_vm7, %v1661_v32 }
0x103f   :  { %2892 = vmatmul.msk.f32.vlgmr.msrb.gmra.mxu3 %vm268_vm7, %v3574_v30 }
0x1040   :  { %1905 = vmatpush.msra.mxu3 %v1789_v20 }
0x1041   :  { %v3109_v36 = vpop.eup %3108 }
0x1042   :  { %v1662_v37 = vmul.f32 %v3109_v36, %v3101_v15  ;;  %v1655_v40 = vpop.xlane.xlu2 %1654 }
0x1043   :  { %3110 = vrcp.f32 %v1655_v40 }
0x1044   :  { %2893 = vmatpush.xpose.msk.msra.mxu0 %vm268_vm7, %v1662_v37 }
0x1047   :  { %2894 = vmatmul.msk.f32.vlgmr.msra.gmra.mxu0 %vm268_vm7, %v3576_v31  ;;  %2898 = vmatmul.msk.f32.vlgmr.msra.gmra.mxu3 %vm268_vm7, %v1871_v39 }
0x1048   :  { %1960 = vmatpush.msrb.mxu0 %v1790_v21 }
0x1049   :  { %v3111_v29 = vpop.eup %3110 }
0x104a   :  { %v1663_v41 = vmul.f32 %v3111_v29, %v3103_v16 }
0x104c   :  { %2895 = vmatpush.xpose.msk.msrb.mxu1 %vm268_vm7, %v1663_v41 }
0x104f   :  { %2896 = vmatmul.msk.f32.vlgmr.msrb.gmra.mxu1 %vm268_vm7, %v3579_v33  ;;  %2899 = vmatmul.msk.f32.vlgmr.msrb.gmra.mxu0 %vm268_vm7, %v1926_v42 }
0x1050   :  { %2015 = vmatpush.msra.mxu1 %v1791_v22 }
0x1091   :  { %v1816_v30 = vpop.trf.xlu2 }
0x1092   :  { %2897 = vmatmul.msk.f32.vlgmr.msrb.gmra.mxu2 %vm268_vm7, %v1816_v30 }
0x1099   :  { %v1981_v43 = vpop.trf.xlu2 }
0x109a   :  { %2900 = vmatmul.msk.f32.vlgmr.msra.gmra.mxu1 %vm268_vm7, %v1981_v43  ;;  %v2988_v43 = vld [vmem:[%s3796_s8 + $0x18] sm:$0xff] }
0x10ba   :  { %v3628_v52 = vpop.f32.mrf.mxu2 }
0x10c2   :  { %v3620_v31 = vpop.f32.mrf.mxu3 }
0x10c4   :  { %v3622_v44 = vpop.f32.mrf.mxu0 }
0x10ca   :  { %v1907_v45 = vpop.f32.mrf.mxu3 }
0x10cb   :  { %v2021_v46 = vmul.f32 0.17677669, %v1907_v45 }
0x10cc   :  { %v1962_v47 = vpop.f32.mrf.mxu0  ;;  %v3630_v54 = vpop.f32.mrf.mxu1 }
0x10cd   :  { %v2025_v48 = vadd.f32 %v2021_v46, %v3445_v9  ;;  %v2022_v49 = vmul.f32 0.17677669, %v1962_v47 }
0x10cf   :  { %v2031_v33 = vsel %vm268_vm7, %v2025_v48, -inf  ;;  %v2026_v50 = vadd.f32 %v2022_v49, %v3445_v9 }
0x10d0   :  { %2032 = vmax.xlane.f32.xlu0 %v2031_v33 }
0x10d1   :  { %v2034_v51 = vsel %vm268_vm7, %v2026_v50, -inf }
0x10d2   :  { %2035 = vmax.xlane.f32.xlu1 %v2034_v51 }
0x1115   :  { %v1852_v57 = vpop.f32.mrf.mxu2 }
0x1116   :  { %v2020_v59 = vmul.f32 0.17677669, %v1852_v57 }
0x1117   :  { %v2017_v61 = vpop.f32.mrf.mxu1 }
0x1118   :  { %v2024_v63 = vadd.f32 %v2020_v59, %v3445_v9  ;;  %v2023_v0 = vmul.f32 0.17677669, %v2017_v61 }
0x111a   :  { %v2028_v58 = vsel %vm268_vm7, %v2024_v63, -inf  ;;  %v2027_v1 = vadd.f32 %v2023_v0, %v3445_v9 }
0x111b   :  { %2029 = vmax.xlane.f32.xlu2 %v2028_v58 }
0x111c   :  { %v2037_v2 = vsel %vm268_vm7, %v2027_v1, -inf }
0x1123   :  { %2038 = vmax.xlane.f32.xlu2 %v2037_v2 }
0x1143   :  { %v2033_v4 = vpop.xlane.xlu0 %2032 }
0x1144   :  { %v2041_v6 = vsub.f32 %v2025_v48, %v2033_v4 }
0x1145   :  { %v2036_v62 = vpop.xlane.xlu1 %2035 }
0x1146   :  { %v2046_v56 = vmul.f32 1.442695, %v2041_v6  ;;  %v2042_v60 = vsub.f32 %v2026_v50, %v2036_v62 }
0x1148   :  { %3112 = vpow2.f32 %v2046_v56  ;;  %v2048_v11 = vmul.f32 1.442695, %v2042_v60 }
0x114e   :  { %v3113_v53 = vpop.eup %3112 }
0x114f   :  { %v2055_v7 = vsel %vm268_vm7, %v3113_v53, 0.0 }
0x1150   :  { %2056 = vadd.xlane.f32.xlu2 %v2055_v7 }
0x118e   :  { %v2030_v8 = vpop.xlane.xlu2 %2029 }
0x118f   :  { %v2040_v10 = vsub.f32 %v2024_v63, %v2030_v8 }
0x1191   :  { %v2044_v55 = vmul.f32 1.442695, %v2040_v10 }
0x1193   :  { %3114 = vpow2.f32 %v2044_v55 }
0x1194   :  { %3116 = vpow2.f32 %v2048_v11 }
0x1196   :  { %v2039_v15 = vpop.xlane.xlu2 %2038 }
0x1197   :  { %v2043_v9 = vsub.f32 %v2027_v1, %v2039_v15 }
0x1199   :  { %v3115_v3 = vpop.eup %3114  ;;  %v2050_v16 = vmul.f32 1.442695, %v2043_v9 }
0x119a   :  { %v2052_v12 = vsel %vm268_vm7, %v3115_v3, 0.0  ;;  %v3117_v13 = vpop.eup %3116 }
0x119b   :  { %3118 = vpow2.f32 %v2050_v16  ;;  %2053 = vadd.xlane.f32.xlu0 %v2052_v12  ;;  %v2058_v21 = vsel %vm268_vm7, %v3117_v13, 0.0 }
0x11a1   :  { %v3119_v19 = vpop.eup %3118 }
0x11a2   :  { %v2061_v20 = vsel %vm268_vm7, %v3119_v19, 0.0 }
0x11a3   :  { %2062 = vadd.xlane.f32.xlu2 %v2061_v20  ;;  %2059 = vadd.xlane.f32.xlu0 %v2058_v21 }
0x11c3   :  { %v2057_v22 = vpop.xlane.xlu2 %2056 }
0x11c4   :  { %3120 = vrcp.f32 %v2057_v22 }
0x11ca   :  { %v3121_v25 = vpop.eup %3120 }
0x11cb   :  { %v2069_v14 = vmul.f32 %v3121_v25, %v3113_v53 }
0x11cd   :  { %2903 = vmatpush.xpose.msk.msrb.mxu3 %vm268_vm7, %v2069_v14 }
0x11d0   :  { %2904 = vmatmul.msk.f32.vlgmr.msrb.gmra.mxu3 %vm268_vm7, %v3598_v24 }
0x120e   :  { %v2054_v27 = vpop.xlane.xlu0 %2053 }
0x120f   :  { %3122 = vrcp.f32 %v2054_v27 }
0x1215   :  { %v3123_v5 = vpop.eup %3122 }
0x1216   :  { %v2068_v28 = vmul.f32 %v3123_v5, %v3115_v3  ;;  %v2063_v32 = vpop.xlane.xlu2 %2062  ;;  %v2060_v34 = vpop.xlane.xlu0 %2059  ;;  %v2989_v3 = vld [vmem:[%s3800_s12 + $0x10] sm:$0xff] }
0x1217   :  { %3124 = vrcp.f32 %v2063_v32 }
0x1218   :  { %3126 = vrcp.f32 %v2060_v34  ;;  %2901 = vmatpush.xpose.msk.msra.mxu2 %vm268_vm7, %v2068_v28 }
0x121b   :  { %2902 = vmatmul.msk.f32.vlgmr.msra.gmra.mxu2 %vm268_vm7, %v3596_v23 }
0x121c   :  { %2245 = vmatpush.bf16.msrb.mxu2 %v2988_v43 }
0x121d   :  { %v3125_v36 = vpop.eup %3124 }
0x121e   :  { %v3127_v37 = vpop.eup %3126  ;;  %v2071_v40 = vmul.f32 %v3125_v36, %v3119_v19 }
0x121f   :  { %v2070_v39 = vmul.f32 %v3127_v37, %v3117_v13  ;;  %v3040_v37 = vld [vmem:[%s3798_s10 + $0x1] ss:$0 sm:$0xff] }
0x1220   :  { %2907 = vmatpush.xpose.msk.msrb.mxu1 %vm268_vm7, %v2071_v40 }
0x1221   :  { %2905 = vmatpush.xpose.msk.msra.mxu0 %vm268_vm7, %v2070_v39 }
0x1223   :  { %2908 = vmatmul.msk.f32.vlgmr.msrb.gmra.mxu1 %vm268_vm7, %v3605_v38  ;;  %v2987_v38 = vld [vmem:[%s3796_s8 + $0x10] sm:$0xff] }
0x1224   :  { %2906 = vmatmul.msk.f32.vlgmr.msra.gmra.mxu0 %vm268_vm7, %v3600_v26  ;;  %2246 = vmatpush.bf16.msrb.mxu2 %v2987_v38 }
0x1253   :  { %v2121_v24 = vpop.f32.mrf.mxu3 }
0x129e   :  { %v2095_v29 = vpop.f32.mrf.mxu2 }
0x129f   :  { %v3019_v41 = vpack.i.bf16 %v2121_v24, %v2095_v29  ;;  %v3041_v29 = vld [vmem:[%s3799_s11 + $0x1] ss:$0 sm:$0xff] }
0x12a0   :  { %v2173_v42 = vpop.f32.mrf.mxu1 }
0x12a1   :  { %v2147_v30 = vpop.f32.mrf.mxu0  ;;  %3020 = vrot.lane.b32.xlu0 %v3019_v41, %s3190_s3 }
0x12a2   :  { %v3024_v23 = vpack.i.bf16 %v2173_v42, %v2147_v30 }
0x12a4   :  { %3025 = vrot.lane.b32.xlu2 %v3024_v23, %s3190_s3 }
0x12fe   :  { %v3026_v33 = vpop.permute.xlu2 %3025 }
0x12ff   :  { %v3028_v50 = vunpack.i.h.bf16 %v3026_v33  ;;  %v3027_v51 = vunpack.i.l.bf16 %v3026_v33 }
0x1301   :  { %v2195_v57 = vsel %vm268_vm7, %v3630_v54, %v3028_v50  ;;  %v2194_v59 = vsel %vm268_vm7, %v3622_v44, %v3027_v51 }
0x1302   :  { %v2197_v61 = vpack.c.bf16 %v2195_v57, %v2194_v59 }
0x1313   :  { %v3021_v26 = vpop.permute.xlu0 %3020 }
0x1314   :  { %v3023_v45 = vunpack.i.h.bf16 %v3021_v26  ;;  %v3022_v46 = vunpack.i.l.bf16 %v3021_v26  ;;  %v2994_v26 = vld [vmem:[%s3802_s14 + $0x38] sm:$0xff] }
0x1315   :  { %2401 = vmatpush.bf16.msrb.mxu0 %v2994_v26  ;;  %v2529_v26 = vld [vmem:[#allocation2 + $0x28] sm:$0xff] }
0x1316   :  { %v2193_v47 = vsel %vm268_vm7, %v3620_v31, %v3023_v45  ;;  %v2192_v48 = vsel %vm268_vm7, %v3628_v52, %v3022_v46  ;;  %v3039_v31 = vld [vmem:[%s3797_s9 + $0x1] ss:$0 sm:$0xff]  ;;  %v2993_v45 = vld [vmem:[%s3802_s14 + $0x30] sm:$0xff]  ;;  %v2992_v46 = vld [vmem:[%s3802_s14 + $0x28] sm:$0xff] }
0x1317   :  { %v2196_v49 = vpack.c.bf16 %v2193_v47, %v2192_v48  ;;  %v2991_v47 = vld [vmem:[%s3802_s14 + $0x20] sm:$0xff] }
0x1319   :  { %2208 = vxpose.xlu1.c.b16.start [1/2] (short) (narrow) %v2196_v49, 16  ;;  %2402 = vmatpush.bf16.msrb.mxu0 %v2993_v45  ;;  %v3042_v49 = vld [vmem:[%s3801_s13 + $0x1] ss:$0 sm:$0xff] }
0x131a   :  { %v2544_v45 = vld [vmem:[#allocation2 + $0xa0] sm:$0xff] }
0x131d   :  { %2403 = vmatpush.bf16.msrb.mxu0 %v2992_v46 }
0x1321   :  { %2404 = vmatpush.bf16.msrb.mxu0 %v2991_v47  ;;  %v2549_v47 = vld [vmem:[#allocation2 + $0xc8] sm:$0xff] }
0x1329   :  { %2209 = vxpose.xlu1.c.b16.end [2/2] (short) (narrow) %v2197_v61, 16 }
0x13c5   :  { %v2216_v63 = vpop.trf.xlu1 }
0x13c6   :  { %2922 = vmatmul.msk.bf16.vlgmr.msrb.gmra.mxu2 %vm186_vm6, %v2216_v63  ;;  %v3043_v63 = vld [vmem:[%s3803_s15 + $0x1] ss:$0 sm:$0xff] }
0x1449   :  { %v2248_v52 = vpop.f32.mrf.mxu2 }
0x144a   :  { %v2249_v0 = vadd.f32 %v3039_v31, %v2248_v52 }
0x144c   :  { %v2253_v58 = vadd.f32 %v2249_v0, %v3562_v17 }
0x144e   :  { %v2255_v1 = vsel %vm186_vm6, %v2253_v58, 0.0 }
0x144f   :  { %2256 = vadd.xlane.f32.xlu0 %v2255_v1 }
0x1451   :  { %v2250_v54 = vpop.f32.mrf.mxu2 }
0x1452   :  { %v2251_v2 = vadd.f32 %v3039_v31, %v2250_v54 }
0x1454   :  { %v2254_v44 = vadd.f32 %v2251_v2, %v3564_v18  ;;  %v2990_v18 = vld [vmem:[%s3800_s12 + $0x18] sm:$0xff] }
0x1455   :  { %2345 = vmatpush.bf16.msra.mxu3 %v2990_v18 }
0x1456   :  { %v2258_v4 = vsel %vm186_vm6, %v2254_v44, 0.0 }
0x1457   :  { %2259 = vadd.xlane.f32.xlu2 %v2258_v4 }
0x1459   :  { %2346 = vmatpush.bf16.msra.mxu3 %v2989_v3  ;;  %v2534_v3 = vld [vmem:[#allocation2 + $0x50] sm:$0xff] }
0x14c2   :  { %v2257_v6 = vpop.xlane.xlu0 %2256 }
0x14c3   :  { %v2261_v56 = vmul.f32 %v2257_v6, %v3502_v35 }
0x14c5   :  { %v2263_v53 = vsub.f32 %v2253_v58, %v2261_v56 }
0x14c7   :  { %v2265_v7 = vmul.f32 %v2263_v53, %v2263_v53 }
0x14c9   :  { %v2267_v62 = vsel %vm186_vm6, %v2265_v7, 0.0 }
0x14ca   :  { %v2260_v8 = vpop.xlane.xlu2 %2259  ;;  %2268 = vadd.xlane.f32.xlu0 %v2267_v62 }
0x14cb   :  { %v2262_v17 = vmul.f32 %v2260_v8, %v3502_v35 }
0x14cd   :  { %v2264_v10 = vsub.f32 %v2254_v44, %v2262_v17 }
0x14cf   :  { %v2266_v60 = vmul.f32 %v2264_v10, %v2264_v10 }
0x14d1   :  { %v2270_v55 = vsel %vm186_vm6, %v2266_v60, 0.0 }
0x14d2   :  { %2271 = vadd.xlane.f32.xlu2 %v2270_v55 }
0x153d   :  { %v2269_v11 = vpop.xlane.xlu0 %2268 }
0x153e   :  { %v2273_v15 = vmul.f32 %v2269_v11, %v3502_v35 }
0x1540   :  { %v2275_v9 = vadd.f32 1e-05, %v2273_v15  ;;  %v2535_v15 = vld [vmem:[#allocation2 + $0x58] sm:$0xff] }
0x1541   :  { %2649 = vmatpush.msra.mxu2 %v2535_v15 }
0x1542   :  { %3128 = vrsqrt.f32 %v2275_v9  ;;  %vm2283_vm8 = vweird.f32 %v2275_v9 }
0x1543   :  { %2650 = vmatpush.msra.mxu2 %v2534_v3 }
0x1545   :  { %v2272_v16 = vpop.xlane.xlu2 %2271 }
0x1546   :  { %v2274_v12 = vmul.f32 %v2272_v16, %v3502_v35  ;;  %v2539_v16 = vld [vmem:[#allocation2 + $0x78] sm:$0xff] }
0x1547   :  { %2672 = vmatpush.msrb.mxu3 %v2539_v16 }
0x1548   :  { %v3129_v13 = vpop.eup %3128  ;;  %v2276_v19 = vadd.f32 1e-05, %v2274_v12  ;;  %v2526_v12 = vld [vmem:[#allocation2 + $0x10] sm:$0xff] }
0x1549   :  { %v2278_v20 = vmul.f32 %v3129_v13, %v2275_v9  ;;  %vm2284_vm7 = vweird.f32 %v3129_v13  ;;  %v2527_v9 = vld [vmem:[#allocation2 + $0x18] sm:$0xff] }
0x154a   :  { %3130 = vrsqrt.f32 %v2276_v19  ;;  %vm2285_vm9 = vmor %vm2283_vm8, %vm2284_vm7  ;;  %vm2293_vm11 = vweird.f32 %v2276_v19  ;;  %2603 = vmatpush.msra.mxu1 %v2527_v9 }
0x154b   :  { %v2279_v21 = vmul.f32 %v3129_v13, %v2278_v20  ;;  %v2525_v20 = vld [vmem:[#allocation2 + $0x8] sm:$0xff] }
0x154c   :  { %2604 = vmatpush.msra.mxu1 %v2526_v12 }
0x154d   :  { %v2280_v22 = vmul.f32 0.5, %v2279_v21  ;;  %v2532_v21 = vld [vmem:[#allocation2 + $0x40] sm:$0xff] }
0x154e   :  { %2605 = vmatpush.msra.mxu1 %v2525_v20 }
0x154f   :  { %v2281_v25 = vsub.f32 1.5, %v2280_v22  ;;  %v2555_v22 = vld [vmem:[#allocation2 + $0xf8] sm:$0xff] }
0x1550   :  { %v3131_v14 = vpop.eup %3130  ;;  %2764 = vmatpush.msra.mxu0 %v2555_v22 }
0x1551   :  { %v2282_v27 = vmul.f32 %v3129_v13, %v2281_v25  ;;  %v2288_v5 = vmul.f32 %v3131_v14, %v2276_v19  ;;  %vm2294_vm10 = vweird.f32 %v3131_v14  ;;  %v2538_v19 = vld [vmem:[#allocation2 + $0x70] sm:$0xff] }
0x1552   :  { %vm2295_vm12 = vmor %vm2293_vm11, %vm2294_vm10  ;;  %2673 = vmatpush.msrb.mxu3 %v2538_v19 }
0x1553   :  { %v2289_v28 = vmul.f32 %v3131_v14, %v2288_v5  ;;  %v2286_v32 = vsel %vm2285_vm9, %v3129_v13, %v2282_v27  ;;  %v2533_v13 = vld [vmem:[#allocation2 + $0x48] sm:$0xff]  ;;  %v2524_v5 = vld [vmem:[#allocation2] sm:$0xff] }
0x1554   :  { %v2297_v40 = vmul.f32 %v2286_v32, %v2263_v53  ;;  %2651 = vmatpush.msra.mxu2 %v2533_v13  ;;  %v2537_v27 = vld [vmem:[#allocation2 + $0x68] sm:$0xff]  ;;  %2606 = vmatpush.msra.mxu1 %v2524_v5  ;;  %v2543_v5 = vld [vmem:[#allocation2 + $0x98] sm:$0xff] }
0x1555   :  { %v2290_v34 = vmul.f32 0.5, %v2289_v28  ;;  %v2547_v28 = vld [vmem:[#allocation2 + $0xb8] sm:$0xff]  ;;  %2674 = vmatpush.msrb.mxu3 %v2537_v27 }
0x1556   :  { %v2304_v41 = vmul.f32 %v3040_v37, %v2297_v40  ;;  %2652 = vmatpush.msra.mxu2 %v2532_v21  ;;  %v2536_v40 = vld [vmem:[#allocation2 + $0x60] sm:$0xff] }
0x1557   :  { %v2291_v36 = vsub.f32 1.5, %v2290_v34  ;;  %2675 = vmatpush.msrb.mxu3 %v2536_v40 }
0x1558   :  { %v2311_v23 = vadd.f32 %v3041_v29, %v2304_v41  ;;  %2718 = vmatpush.msrb.mxu2 %v2547_v28  ;;  %v2551_v41 = vld [vmem:[#allocation2 + $0xd8] sm:$0xff] }
0x1559   :  { %v2292_v39 = vmul.f32 %v3131_v14, %v2291_v36  ;;  %v2554_v36 = vld [vmem:[#allocation2 + $0xf0] sm:$0xff] }
0x155a   :  { %2765 = vmatpush.msra.mxu0 %v2554_v36  ;;  %v2542_v36 = vld [vmem:[#allocation2 + $0x90] sm:$0xff] }
0x155b   :  { %v2296_v24 = vsel %vm2295_vm12, %v3131_v14, %v2292_v39  ;;  %v2531_v39 = vld [vmem:[#allocation2 + $0x38] sm:$0xff] }
0x155c   :  { %v2298_v42 = vmul.f32 %v2296_v24, %v2264_v10  ;;  %2626 = vmatpush.msrb.mxu1 %v2531_v39  ;;  %v2553_v24 = vld [vmem:[#allocation2 + $0xe8] sm:$0xff] }
0x155d   :  { %2766 = vmatpush.msra.mxu0 %v2553_v24  ;;  %v2541_v39 = vld [vmem:[#allocation2 + $0x88] sm:$0xff] }
0x155e   :  { %v2305_v30 = vmul.f32 %v3040_v37, %v2298_v42  ;;  %v2530_v42 = vld [vmem:[#allocation2 + $0x30] sm:$0xff] }
0x155f   :  { %2627 = vmatpush.msrb.mxu1 %v2530_v42 }
0x1560   :  { %v2312_v43 = vadd.f32 %v3041_v29, %v2305_v30  ;;  %v2545_v30 = vld [vmem:[#allocation2 + $0xa8] sm:$0xff] }
0x1561   :  { %2628 = vmatpush.msrb.mxu1 %v2529_v26  ;;  %v3047_v26 = vld [vmem:[%s3807_s19 + $0x2] ss:$0 sm:$0xff] }
0x1562   :  { %v2313_v38 = vpack.c.bf16 %v2312_v43, %v2311_v23 }
0x1564   :  { %2938 = vmatmul.msk.bf16.vlgmr.msra.gmra.mxu3 %vm186_vm6, %v2313_v38 }
0x1565   :  { %2741 = vmatpush.msra.mxu3 %v2551_v41  ;;  %v2540_v41 = vld [vmem:[#allocation2 + $0x80] sm:$0xff] }
0x15e7   :  { %v2348_v48 = vpop.f32.mrf.mxu3 }
0x15e8   :  { %v2349_v33 = vadd.f32 %v3042_v49, %v2348_v48  ;;  %v2528_v48 = vld [vmem:[#allocation2 + $0x20] sm:$0xff] }
0x15e9   :  { %2629 = vmatpush.msrb.mxu1 %v2528_v48  ;;  %v3049_v48 = vld [vmem:[%s3807_s19 + $0x3] ss:$0 sm:$0xff] }
0x15ea   :  { %v2353_v57 = vmax.f32 %v2349_v33, 0.0 }
0x15ef   :  { %v2350_v50 = vpop.f32.mrf.mxu3 }
0x15f0   :  { %v2351_v51 = vadd.f32 %v3042_v49, %v2350_v50 }
0x15f2   :  { %v2354_v59 = vmax.f32 %v2351_v51, 0.0  ;;  %v2548_v51 = vld [vmem:[#allocation2 + $0xc0] sm:$0xff] }
0x15f4   :  { %v2355_v61 = vpack.c.bf16 %v2354_v59, %v2353_v57  ;;  %v3044_v57 = vld [vmem:[%s3804_s16 + $0x1] ss:$0 sm:$0xff] }
0x15f6   :  { %2964 = vmatmul.msk.bf16.vlgmr.msrb.gmra.mxu0 %vm1244_vm15, %v2355_v61 }
0x1673   :  { %v2406_v31 = vpop.f32.mrf.mxu0 }
0x1674   :  { %v2407_v52 = vadd.f32 %v3043_v63, %v2406_v31 }
0x1676   :  { %v2411_v0 = vadd.f32 %v2407_v52, %v2311_v23  ;;  %v2552_v23 = vld [vmem:[#allocation2 + $0xe0] sm:$0xff] }
0x1677   :  { %2767 = vmatpush.msra.mxu0 %v2552_v23  ;;  %v3046_v23 = vld [vmem:[%s3807_s19] ss:$0 sm:$0xff] }
0x1678   :  { %v2413_v58 = vsel %vm186_vm6, %v2411_v0, 0.0 }
0x1679   :  { %2414 = vadd.xlane.f32.xlu0 %v2413_v58 }
0x167b   :  { %v2408_v1 = vpop.f32.mrf.mxu0 }
0x167c   :  { %v2409_v54 = vadd.f32 %v3043_v63, %v2408_v1  ;;  %v3045_v63 = vld [vmem:[%s3805_s17 + $0x1] ss:$0 sm:$0xff] }
0x167e   :  { %v2412_v2 = vadd.f32 %v2409_v54, %v2312_v43  ;;  %v2550_v43 = vld [vmem:[#allocation2 + $0xd0] sm:$0xff] }
0x167f   :  { %2742 = vmatpush.msra.mxu3 %v2550_v43 }
0x1680   :  { %v2416_v44 = vsel %vm186_vm6, %v2412_v2, 0.0 }
0x1681   :  { %2417 = vadd.xlane.f32.xlu2 %v2416_v44  ;;  %2743 = vmatpush.msra.mxu3 %v2549_v47 }
0x1683   :  { %2744 = vmatpush.msra.mxu3 %v2548_v51 }
0x16ec   :  { %v2415_v4 = vpop.xlane.xlu0 %2414 }
0x16ed   :  { %v2419_v6 = vmul.f32 %v2415_v4, %v3502_v35 }
0x16ef   :  { %v3717_v56 = vsub.f32 %v2411_v0, %v2419_v6  ;;  %v3194_v0 = vmov 1983009808  }
0x16f0   :  { %v2475_v58 = vunpack.c.l.s4 %v3194_v0 }
0x16f1   :  { %v2423_v53 = vmul.f32 %v3717_v56, %v3717_v56 }
0x16f2   :  { %v2476_v4 = vunpack.c.0.s8 %v2475_v58  ;;  %v3053_v58 = vld [vmem:[%s3807_s19 + $0x4] ss:$0 sm:$0xff] }
0x16f3   :  { %v2425_v7 = vsel %vm186_vm6, %v2423_v53, 0.0 }
0x16f4   :  { %v2418_v62 = vpop.xlane.xlu2 %2417  ;;  %2426 = vadd.xlane.f32.xlu0 %v2425_v7 }
0x16f5   :  { %v2420_v8 = vmul.f32 %v2418_v62, %v3502_v35  ;;  %v3195_v62 = vmov 1934713408  }
0x16f7   :  { %v3723_v17 = vsub.f32 %v2412_v2, %v2420_v8  ;;  %v2497_v8 = vunpack.c.l.s4 %v3195_v62 }
0x16f9   :  { %v2424_v10 = vmul.f32 %v3723_v17, %v3723_v17 }
0x16fb   :  { %v2428_v60 = vsel %vm186_vm6, %v2424_v10, 0.0 }
0x16fc   :  { %2429 = vadd.xlane.f32.xlu2 %v2428_v60 }
0x1767   :  { %v2427_v55 = vpop.xlane.xlu0 %2426 }
0x1768   :  { %v2431_v18 = vmul.f32 %v2427_v55, %v3502_v35 }
0x176a   :  { %v3729_v11 = vadd.f32 1e-05, %v2431_v18  ;;  %v2498_v18 = vunpack.c.0.s8 %v2497_v8 }
0x176c   :  { %3132 = vrsqrt.f32 %v3729_v11  ;;  %vm2441_vm14 = vweird.f32 %v3729_v11 }
0x176f   :  { %v2430_v25 = vpop.xlane.xlu2 %2429 }
0x1770   :  { %v2432_v14 = vmul.f32 %v2430_v25, %v3502_v35  ;;  %v2546_v35 = vld [vmem:[#allocation2 + $0xb0] sm:$0xff] }
0x1771   :  { %2719 = vmatpush.msrb.mxu2 %v2546_v35 }
0x1772   :  { %v3133_v32 = vpop.eup %3132  ;;  %v2434_v34 = vadd.f32 1e-05, %v2432_v14 }
0x1773   :  { %v2436_v37 = vmul.f32 %v3133_v32, %v3729_v11  ;;  %2720 = vmatpush.msrb.mxu2 %v2545_v30  ;;  %vm2442_vm13 = vweird.f32 %v3133_v32 }
0x1774   :  { %3134 = vrsqrt.f32 %v2434_v34  ;;  %vm2443_vm15 = vmor %vm2441_vm14, %vm2442_vm13  ;;  %vm2451_vm1 = vweird.f32 %v2434_v34 }
0x1775   :  { %v2437_v29 = vmul.f32 %v3133_v32, %v2436_v37  ;;  %2721 = vmatpush.msrb.mxu2 %v2544_v45  ;;  %v3048_v45 = vld [vmem:[%s3807_s19 + $0x7] ss:$0 sm:$0xff] }
0x1777   :  { %v2438_v38 = vmul.f32 0.5, %v2437_v29 }
0x1779   :  { %v2439_v46 = vsub.f32 1.5, %v2438_v38 }
0x177a   :  { %v3135_v49 = vpop.eup %3134 }
0x177b   :  { %v2440_v33 = vmul.f32 %v3133_v32, %v2439_v46  ;;  %v2446_v50 = vmul.f32 %v3135_v49, %v2434_v34  ;;  %vm2452_vm0 = vweird.f32 %v3135_v49 }
0x177c   :  { %vm2453_vm2 = vmor %vm2451_vm1, %vm2452_vm0 }
0x177d   :  { %v2444_v59 = vsel %vm2443_vm15, %v3133_v32, %v2440_v33  ;;  %v2447_v61 = vmul.f32 %v3135_v49, %v2446_v50  ;;  %v3050_v50 = vld [vmem:[%s3807_s19 + $0x1] ss:$0 sm:$0xff] }
0x177e   :  { %v2455_v31 = vmul.f32 %v2444_v59, %v3717_v56 }
0x177f   :  { %v2448_v52 = vmul.f32 0.5, %v2447_v61 }
0x1780   :  { %v2462_v1 = vmul.f32 %v3044_v57, %v2455_v31 }
0x1781   :  { %v2449_v54 = vsub.f32 1.5, %v2448_v52  ;;  %v3052_v52 = vld [vmem:[%s3807_s19 + $0x6] ss:$0 sm:$0xff] }
0x1782   :  { %v2469_v2 = vadd.f32 %v3045_v63, %v2462_v1 }
0x1783   :  { %v2450_v44 = vmul.f32 %v3135_v49, %v2449_v54 }
0x1784   :  { %v2471_v6 = vrot.slane %v2469_v2, 4  ;;  %v2477_v10 = vperm.slane %v2469_v2, %v2476_v4 }
0x1785   :  { %v2454_v53 = vsel %vm2453_vm2, %v3135_v49, %v2450_v44 }
0x1786   :  { %v2456_v7 = vmul.f32 %v2454_v53, %v3723_v17  ;;  %v2473_v56 = vsel %vm2472_vm3, 0.0, %v2471_v6  ;;  %v2494_v3 = vrot.slane %v2477_v10, 4 }
0x1787   :  { %v2481_v11 = vperm.slane %v2473_v56, %v2476_v4 }
0x1788   :  { %v2463_v60 = vmul.f32 %v3044_v57, %v2456_v7 }
0x1789   :  { %v2506_v17 = vrot.slane %v2481_v11, 4 }
0x178a   :  { %v2470_v55 = vadd.f32 %v3045_v63, %v2463_v60  ;;  %v3051_v63 = vld [vmem:[%s3807_s19 + $0x5] ss:$0 sm:$0xff] }
0x178c   :  { %v2482_v15 = vrot.slane %v2470_v55, 4  ;;  %v2487_v9 = vperm.slane %v2470_v55, %v2476_v4 }
0x178e   :  { %v2495_v16 = vsel %vm2472_vm3, %v2487_v9, %v2494_v3  ;;  %v2492_v12 = vrot.slane %v2487_v9, 4  ;;  %v2483_v13 = vsel %vm2472_vm3, 0.0, %v2482_v15 }
0x178f   :  { %v2503_v19 = vperm.slane %v2495_v16, %v2498_v18  ;;  %v2491_v20 = vperm.slane %v2483_v13, %v2476_v4 }
0x1790   :  { %v2493_v21 = vsel %vm2472_vm3, %v2492_v12, %v2477_v10 }
0x1791   :  { %2969 = vmatmul.msk.f32.vlgmr.msra.gmra.mxu2 %vm186_vm6, %v2503_v19  ;;  %v2499_v22 = vperm.slane %v2493_v21, %v2498_v18  ;;  %v2518_v25 = vrot.slane %v2503_v19, 4  ;;  %v2507_v14 = vsel %vm2472_vm3, %v2491_v20, %v2506_v17  ;;  %v2504_v27 = vrot.slane %v2491_v20, 4 }
0x1792   :  { %v2515_v28 = vperm.slane %v2507_v14, %v2498_v18 }
0x1793   :  { %2967 = vmatmul.msk.f32.vlgmr.msra.gmra.mxu1 %vm186_vm6, %v2499_v22  ;;  %v2519_v32 = vsel %vm2472_vm3, 0.0, %v2518_v25  ;;  %v2505_v34 = vsel %vm2472_vm3, %v2504_v27, %v2481_v11  ;;  %v2516_v29 = vrot.slane %v2499_v22, 4 }
0x1794   :  { %2970 = vmatmul.msk.f32.vlgmr.msrb.gmra.mxu3 %vm186_vm6, %v2519_v32  ;;  %v2522_v37 = vrot.slane %v2515_v28, 4  ;;  %v2511_v40 = vperm.slane %v2505_v34, %v2498_v18  ;;  %2695 = vmatpush.msra.mxu1 %v2543_v5 }
0x1795   :  { %v2517_v30 = vsel %vm2472_vm3, 0.0, %v2516_v29 }
0x1796   :  { %v2523_v35 = vsel %vm2472_vm3, 0.0, %v2522_v37  ;;  %v2520_v24 = vrot.slane %v2511_v40, 4  ;;  %2696 = vmatpush.msra.mxu1 %v2542_v36 }
0x1797   :  { %2974 = vmatmul.msk.f32.vlgmr.msra.gmra.mxu0 %vm186_vm6, %v2523_v35 }
0x1798   :  { %v2521_v42 = vsel %vm2472_vm3, 0.0, %v2520_v24  ;;  %2697 = vmatpush.msra.mxu1 %v2541_v39 }
0x1799   :  { %2972 = vmatmul.msk.f32.vlgmr.msrb.gmra.mxu2 %vm186_vm6, %v2521_v42 }
0x179a   :  { %2698 = vmatpush.msra.mxu1 %v2540_v41 }
0x179b   :  { %2968 = vmatmul.msk.f32.vlgmr.msrb.gmra.mxu1 %vm186_vm6, %v2517_v30 }
0x179c   :  { %2973 = vmatmul.msk.f32.vlgmr.msra.gmra.mxu3 %vm186_vm6, %v2515_v28 }
0x17a3   :  { %2971 = vmatmul.msk.f32.vlgmr.msra.gmra.mxu1 %vm186_vm6, %v2511_v40 }
0x1810   :  { %v2608_v43 = vpop.f32.mrf.mxu1 }
0x1811   :  { %v2609_v38 = vadd.f32 %v3046_v23, %v2608_v43 }
0x1813   :  { %2772 = vst [vmem:[#allocation5] sm:$0x3] %v2609_v38 }
0x1814   :  { %v2654_v46 = vpop.f32.mrf.mxu2  ;;  %v2769_v47 = vpop.f32.mrf.mxu0 }
0x1815   :  { %v2655_v49 = vadd.f32 %v3047_v26, %v2654_v46  ;;  %v2770_v33 = vadd.f32 %v3048_v45, %v2769_v47 }
0x1817   :  { %2774 = vst [vmem:[#allocation5 + $0x4] sm:$0x3] %v2655_v49  ;;  %v2677_v51 = vpop.f32.mrf.mxu3 }
0x1818   :  { %2779 = vst [vmem:[#allocation5 + $0xe] sm:$0x3] %v2770_v33  ;;  %v2678_v57 = vadd.f32 %v3049_v48, %v2677_v51  ;;  %v2631_v59 = vpop.f32.mrf.mxu1 }
0x1819   :  { %v2632_v61 = vadd.f32 %v3050_v50, %v2631_v59 }
0x181a   :  { %2775 = vst [vmem:[#allocation5 + $0x6] sm:$0x3] %v2678_v57 }
0x181b   :  { %2773 = vst [vmem:[#allocation5 + $0x2] sm:$0x3] %v2632_v61 }
0x181c   :  { %v2723_v31 = vpop.f32.mrf.mxu2 }
0x181d   :  { %v2724_v0 = vadd.f32 %v3051_v63, %v2723_v31 }
0x181f   :  { %2777 = vst [vmem:[#allocation5 + $0xa] sm:$0x3] %v2724_v0  ;;  %v2746_v1 = vpop.f32.mrf.mxu3 }
0x1820   :  { %v2747_v54 = vadd.f32 %v3052_v52, %v2746_v1  ;;  %v2700_v2 = vpop.f32.mrf.mxu1 }
0x1821   :  { %v2701_v44 = vadd.f32 %v3053_v58, %v2700_v2 }
0x1822   :  { %2778 = vst [vmem:[#allocation5 + $0xc] sm:$0x3] %v2747_v54 }
0x1823   :  { %2776 = vst [vmem:[#allocation5 + $0x8] sm:$0x3] %v2701_v44 }
0x1824   :  { %2792 = dma.vmem_to_hbm [thread:$0]  %s2785_s2, 256, %s2787_s18, [#allocation4], %s3197_s26, %s3197_s26, %s3198_s27  }
0x1825   :  { %3186 = dma.done.wait [#allocation4], 256  }
0x1826   :  { %3187 = vsyncadd [#allocation4], 4294967040 }
0x1827   :  { %2797 = vsyncpa [#allocation3], 1 }
0x1828   :  { %2798 = vsyncpa [#allocation4], 1 }

</bundles_post_ra>
